<compile_context>
chip_gen: v5e
topology: v5e:2x2
jax: 0.10.0
libtpu: 0.0.40
codegen_flags: <defaults>
</compile_context>

<pallas_src>
import functools

import jax
import jax.numpy as jnp
from jax.experimental import pallas as pl
from jax.experimental.pallas import tpu as pltpu

EPS = 1e-5
OUT_PAD = 128          # lane-dense padded width for the (B, 1) head output
MAX_BATCH_TILE = 512   # batch tile when batch is large (amortizes per-step cost)


# ------------------------------- param layout ---------------------------------

def build_layout(innn, dim, hid, scale=1.5):
    """Static slab layout: where each Linear / LayerNorm lives in the packed slabs."""
    hid2 = int(hid * scale)
    lin_order = [("mlpa", innn, dim, True)]
    for blk in ("mlpb", "mlpc", "mlpd", "mlpe"):
        lin_order += [(blk + "_1", dim, hid, True),
                      (blk + "_2", hid, hid2, True),
                      (blk + "_3", hid2, dim, True)]
    lin_order += [("midres_1", dim, dim // 2, False),
                  ("midres_2", dim // 2, dim, False),
                  ("mid_1", dim, dim, False),
                  ("mid_2", dim, 1, False)]

    pad_w = max(max(k for _, k, _, _ in lin_order),
                max(n for _, _, n, _ in lin_order))   # 48 here

    lin, ln = {}, {}
    row, vec = 0, 0
    for name, k, n, has_ln in lin_order:
        lin[name] = (row, k, n, vec)      # (row offset, fan_in, fan_out, bias row)
        row += k
        vec += 1
        if has_ln:
            ln[name] = (vec, vec + 1, n)  # (gamma row, beta row, width)
            vec += 2
    return dict(lin=lin, ln=ln, w_rows=row, n_vecs=vec, pad_w=pad_w,
                dims=(innn, dim, hid, hid2))


# ---------------------------------- kernel ------------------------------------

def resblock_kernel(x_ref, w_ref, v_ref, o_ref, *, layout):
    lin, ln = layout["lin"], layout["ln"]

    def linear(h, name):
        r, k, n, bi = lin[name]
        w = w_ref[r:r + k, 0:n]            # (k, n) static, 8-aligned row slice
        b = v_ref[bi:bi + 1, 0:n]          # (1, n)
        return jnp.dot(h, w, preferred_element_type=jnp.float32) + b

    def layer_norm(h, name):
        gi, bi, n = ln[name]
        mu = jnp.mean(h, axis=-1, keepdims=True)
        var = jnp.mean((h - mu) ** 2, axis=-1, keepdims=True)
        hn = (h - mu) * jax.lax.rsqrt(var + EPS)
        return hn * v_ref[gi:gi + 1, 0:n] + v_ref[bi:bi + 1, 0:n]

    def relu(t):
        return jnp.maximum(t, 0.0)

    x = x_ref[...]
    # mlpa: Linear -> LayerNorm -> ReLU
    h = relu(layer_norm(linear(x, "mlpa"), "mlpa"))
    # four residual blocks (unrolled in-kernel, activations never leave VMEM)
    for blk in ("mlpb", "mlpc", "mlpd", "mlpe"):
        t = relu(layer_norm(linear(h, blk + "_1"), blk + "_1"))
        t = relu(layer_norm(linear(t, blk + "_2"), blk + "_2"))
        t = layer_norm(linear(t, blk + "_3"), blk + "_3")
        h = relu(h + t)
    # head: mid(relu(h + midres(h)))
    r = linear(relu(linear(h, "midres_1")), "midres_2")
    y = relu(h + r)
    y = linear(relu(linear(y, "mid_1")), "mid_2")          # (tile_b, 1)
    # lane-dense store; the wrapper slices column 0 back out
    o_ref[...] = jnp.broadcast_to(y, o_ref.shape)


# ------------------------------- pallas wrapper --------------------------------

def resblock_forward(x, w_slab, v_slab, layout):
    batch, innn = x.shape

    # batch tiling: whole (8-padded) batch when small, 512-row tiles when large
    if batch <= MAX_BATCH_TILE:
        tile_b = ((batch + 7) // 8) * 8
    else:
        tile_b = MAX_BATCH_TILE
    padded_b = ((batch + tile_b - 1) // tile_b) * tile_b
    if padded_b != batch:
        x = jnp.pad(x, ((0, padded_b - batch), (0, 0)))
    grid = (padded_b // tile_b,)

    flops = 2 * padded_b * sum(k * n for (_, k, n, _) in layout["lin"].values())
    cost = pl.CostEstimate(
        flops=flops,
        transcendentals=padded_b * len(layout["ln"]),       # one rsqrt per LN per row
        bytes_accessed=4 * (x.size + w_slab.size + v_slab.size + padded_b * OUT_PAD),
    )

    out_padded = pl.pallas_call(
        functools.partial(resblock_kernel, layout=layout),
        out_shape=jax.ShapeDtypeStruct((padded_b, OUT_PAD), jnp.float32),
        grid_spec=pltpu.PrefetchScalarGridSpec(
            num_scalar_prefetch=0,
            grid=grid,
            in_specs=[
                pl.BlockSpec((tile_b, innn), lambda i: (i, 0)),     # activation tile
                pl.BlockSpec(w_slab.shape, lambda i: (0, 0)),       # weights resident
                pl.BlockSpec(v_slab.shape, lambda i: (0, 0)),       # bias/LN resident
            ],
            out_specs=pl.BlockSpec((tile_b, OUT_PAD), lambda i: (i, 0)),
        ),
        compiler_params=pltpu.CompilerParams(dimension_semantics=("parallel",)),
        cost_estimate=cost,
    )(x, w_slab, v_slab)

    return out_padded[:batch, :1]


# -------------------------- parameter init & packing ---------------------------

def _init_linear(key, fan_in, fan_out):
    kw, kb = jax.random.split(key)
    bound = 1.0 / (fan_in ** 0.5)
    w = jax.random.uniform(kw, (fan_in, fan_out), jnp.float32, -bound, bound)
    b = jax.random.uniform(kb, (1, fan_out), jnp.float32, -bound, bound)
    return w, b


def _init_ln(n):
    return jnp.ones((1, n), jnp.float32), jnp.zeros((1, n), jnp.float32)


def init_resblock_params(key, innn, dim, hid, scale=1.5):
    hid2 = int(hid * scale)
    keys = iter(jax.random.split(key, 32))

    def linear_ln(fan_in, fan_out):
        w, b = _init_linear(next(keys), fan_in, fan_out)
        g, be = _init_ln(fan_out)
        return (w, b, g, be)

    params = {"mlpa": linear_ln(innn, dim)}
    for name in ("mlpb", "mlpc", "mlpd", "mlpe"):
        params[name] = (*linear_ln(dim, hid),
                        *linear_ln(hid, hid2),
                        *linear_ln(hid2, dim))
    wr1, br1 = _init_linear(next(keys), dim, dim // 2)
    wr2, br2 = _init_linear(next(keys), dim // 2, dim)
    params["midres"] = (wr1, br1, wr2, br2)
    wm1, bm1 = _init_linear(next(keys), dim, dim)
    wm2, bm2 = _init_linear(next(keys), dim, 1)
    params["mid"] = (wm1, bm1, wm2, bm2)
    return params


def pack_params(params, layout):
    """Pack the per-module params into one weight slab and one bias/LN slab."""
    pad_w = layout["pad_w"]
    w_slab = jnp.zeros((layout["w_rows"], pad_w), jnp.float32)
    v_slab = jnp.zeros((layout["n_vecs"], pad_w), jnp.float32)

    def put_linear(w_slab, v_slab, name, w, b):
        r, k, n, bi = layout["lin"][name]
        w_slab = w_slab.at[r:r + k, 0:n].set(w)
        v_slab = v_slab.at[bi, 0:n].set(jnp.reshape(b, (n,)))
        return w_slab, v_slab

    def put_ln(v_slab, name, g, be):
        gi, bei, n = layout["ln"][name]
        v_slab = v_slab.at[gi, 0:n].set(jnp.reshape(g, (n,)))
        v_slab = v_slab.at[bei, 0:n].set(jnp.reshape(be, (n,)))
        return v_slab

    w, b, g, be = params["mlpa"]
    w_slab, v_slab = put_linear(w_slab, v_slab, "mlpa", w, b)
    v_slab = put_ln(v_slab, "mlpa", g, be)
    for blk in ("mlpb", "mlpc", "mlpd", "mlpe"):
        p = params[blk]
        for j in range(3):
            w, b, g, be = p[4 * j: 4 * j + 4]
            name = f"{blk}_{j + 1}"
            w_slab, v_slab = put_linear(w_slab, v_slab, name, w, b)
            v_slab = put_ln(v_slab, name, g, be)
    wr1, br1, wr2, br2 = params["midres"]
    w_slab, v_slab = put_linear(w_slab, v_slab, "midres_1", wr1, br1)
    w_slab, v_slab = put_linear(w_slab, v_slab, "midres_2", wr2, br2)
    wm1, bm1, wm2, bm2 = params["mid"]
    w_slab, v_slab = put_linear(w_slab, v_slab, "mid_1", wm1, bm1)
    w_slab, v_slab = put_linear(w_slab, v_slab, "mid_2", wm2, bm2)
    return w_slab, v_slab


# ------------------------------ pure-JAX reference ------------------------------

def _ref_forward(x, params):
    def ln(h, g, b):
        mu = jnp.mean(h, axis=-1, keepdims=True)
        var = jnp.mean((h - mu) ** 2, axis=-1, keepdims=True)
        return (h - mu) * jax.lax.rsqrt(var + EPS) * g + b

    def relu(t):
        return jnp.maximum(t, 0.0)

    def lin_ln_relu(x, w, b, g, be):
        return relu(ln(x @ w + b, g, be))

    def blk(x, p):
        h = lin_ln_relu(x, *p[0:4])
        h = lin_ln_relu(h, *p[4:8])
        h = ln(h @ p[8] + p[9], p[10], p[11])
        return relu(x + h)

    x = lin_ln_relu(x, *params["mlpa"])
    for name in ("mlpb", "mlpc", "mlpd", "mlpe"):
        x = blk(x, params[name])
    wr1, br1, wr2, br2 = params["midres"]
    y = relu(x + (relu(x @ wr1 + br1) @ wr2 + br2))
    wm1, bm1, wm2, bm2 = params["mid"]
    return relu(y @ wm1 + bm1) @ wm2 + bm2


# ----------------------------------- main --------------------------------------

if __name__ == "__main__":
    INNN, DIM, HID = 32, 16, 32   # Resblock(innn=32, dim=16, hid=32)
    BATCH = 8

    key = jax.random.PRNGKey(0)
    k_x, k_p = jax.random.split(key)
    x = jax.random.normal(k_x, (BATCH, INNN), dtype=jnp.float32)

    layout = build_layout(INNN, DIM, HID)
    params = init_resblock_params(k_p, INNN, DIM, HID)
    w_slab, v_slab = pack_params(params, layout)

    out = jax.block_until_ready(resblock_forward(x, w_slab, v_slab, layout))
    ref = jax.block_until_ready(_ref_forward(x, params))

    assert out.shape == (BATCH, 1), out.shape
    assert jnp.allclose(out, ref, rtol=1e-4, atol=1e-4), (out, ref)
    print("KERNEL_OK")
</pallas_src>

<mosaic_0001>
module attributes {stable_mosaic.version = 11 : i64} {
  func.func @resblock_kernel(%arg0: i32, %arg1: memref<8x32xf32, #tpu.memory_space<vmem>>, %arg2: memref<472x48xf32, #tpu.memory_space<vmem>>, %arg3: memref<43x48xf32, #tpu.memory_space<vmem>>, %arg4: memref<8x128xf32, #tpu.memory_space<vmem>>) attributes {dimension_semantics = [#tpu.dimension_semantics<parallel>], iteration_bounds = array<i64: 1>, scalar_prefetch = 0 : i64, scratch_operands = 0 : i64, tpu.core_type = #tpu.core_type<tc>, window_params = [{transform_indices = @transform_0, window_bounds = array<i64: 8, 32>}, {pipeline_mode = #tpu.pipeline_mode<synchronous>, transform_indices = @transform_1, window_bounds = array<i64: 472, 48>}, {pipeline_mode = #tpu.pipeline_mode<synchronous>, transform_indices = @transform_2, window_bounds = array<i64: 43, 48>}, {transform_indices = @transform_3, window_bounds = array<i64: 8, 128>}]} {
    %c0 = arith.constant 0 : index
    %c0_0 = arith.constant 0 : index
    %0 = vector.load %arg1[%c0, %c0_0] : memref<8x32xf32, #tpu.memory_space<vmem>>, vector<8x32xf32>
    %c0_1 = arith.constant 0 : index
    %c0_2 = arith.constant 0 : index
    %1 = vector.load %arg2[%c0_1, %c0_2] : memref<472x48xf32, #tpu.memory_space<vmem>>, vector<32x16xf32>
    %c0_3 = arith.constant 0 : index
    %c0_4 = arith.constant 0 : index
    %2 = vector.load %arg3[%c0_3, %c0_4] : memref<43x48xf32, #tpu.memory_space<vmem>>, vector<1x16xf32>
    %cst = arith.constant dense<0.000000e+00> : vector<8x16xf32>
    %3 = tpu.matmul %0, %1, %cst {dimension_numbers = #tpu.dot_dimension_numbers<[1], [0], [0], [1], [0, 0, 1, 1], [], []>} : vector<8x32xf32>, vector<32x16xf32>, vector<8x16xf32> -> vector<8x16xf32>
    %4 = vector.broadcast %2 : vector<1x16xf32> to vector<8x16xf32>
    %5 = arith.addf %3, %4 : vector<8x16xf32>
    %cst_5 = arith.constant dense<0.000000e+00> : vector<8xf32>
    %6 = vector.multi_reduction <add>, %5, %cst_5 [1] : vector<8x16xf32> to vector<8xf32>
    %7 = vector.shape_cast %6 : vector<8xf32> to vector<8x1xf32>
    %cst_6 = arith.constant 1.600000e+01 : f32
    %8 = vector.broadcast %cst_6 : f32 to vector<8x1xf32>
    %9 = arith.divf %7, %8 : vector<8x1xf32>
    %10 = vector.broadcast %9 : vector<8x1xf32> to vector<8x16xf32>
    %11 = arith.subf %5, %10 : vector<8x16xf32>
    %12 = arith.mulf %11, %11 : vector<8x16xf32>
    %cst_7 = arith.constant dense<0.000000e+00> : vector<8xf32>
    %13 = vector.multi_reduction <add>, %12, %cst_7 [1] : vector<8x16xf32> to vector<8xf32>
    %14 = vector.shape_cast %13 : vector<8xf32> to vector<8x1xf32>
    %cst_8 = arith.constant 1.600000e+01 : f32
    %15 = vector.broadcast %cst_8 : f32 to vector<8x1xf32>
    %16 = arith.divf %14, %15 : vector<8x1xf32>
    %17 = vector.broadcast %9 : vector<8x1xf32> to vector<8x16xf32>
    %18 = arith.subf %5, %17 : vector<8x16xf32>
    %cst_9 = arith.constant 9.99999974E-6 : f32
    %19 = vector.broadcast %cst_9 : f32 to vector<8x1xf32>
    %20 = arith.addf %16, %19 : vector<8x1xf32>
    %21 = math.rsqrt %20 : vector<8x1xf32>
    %22 = vector.broadcast %21 : vector<8x1xf32> to vector<8x16xf32>
    %23 = arith.mulf %18, %22 : vector<8x16xf32>
    %c1 = arith.constant 1 : index
    %c0_10 = arith.constant 0 : index
    %24 = vector.load %arg3[%c1, %c0_10] : memref<43x48xf32, #tpu.memory_space<vmem>>, vector<1x16xf32>
    %25 = vector.broadcast %24 : vector<1x16xf32> to vector<8x16xf32>
    %26 = arith.mulf %23, %25 : vector<8x16xf32>
    %c2 = arith.constant 2 : index
    %c0_11 = arith.constant 0 : index
    %27 = vector.load %arg3[%c2, %c0_11] : memref<43x48xf32, #tpu.memory_space<vmem>>, vector<1x16xf32>
    %28 = vector.broadcast %27 : vector<1x16xf32> to vector<8x16xf32>
    %29 = arith.addf %26, %28 : vector<8x16xf32>
    %cst_12 = arith.constant 0.000000e+00 : f32
    %30 = vector.broadcast %cst_12 : f32 to vector<8x16xf32>
    %31 = arith.maximumf %29, %30 : vector<8x16xf32>
    %c32 = arith.constant 32 : index
    %c0_13 = arith.constant 0 : index
    %32 = vector.load %arg2[%c32, %c0_13] : memref<472x48xf32, #tpu.memory_space<vmem>>, vector<16x32xf32>
    %c3 = arith.constant 3 : index
    %c0_14 = arith.constant 0 : index
    %33 = vector.load %arg3[%c3, %c0_14] : memref<43x48xf32, #tpu.memory_space<vmem>>, vector<1x32xf32>
    %cst_15 = arith.constant dense<0.000000e+00> : vector<8x32xf32>
    %34 = tpu.matmul %31, %32, %cst_15 {dimension_numbers = #tpu.dot_dimension_numbers<[1], [0], [0], [1], [0, 0, 1, 1], [], []>} : vector<8x16xf32>, vector<16x32xf32>, vector<8x32xf32> -> vector<8x32xf32>
    %35 = vector.broadcast %33 : vector<1x32xf32> to vector<8x32xf32>
    %36 = arith.addf %34, %35 : vector<8x32xf32>
    %cst_16 = arith.constant dense<0.000000e+00> : vector<8xf32>
    %37 = vector.multi_reduction <add>, %36, %cst_16 [1] : vector<8x32xf32> to vector<8xf32>
    %38 = vector.shape_cast %37 : vector<8xf32> to vector<8x1xf32>
    %cst_17 = arith.constant 3.200000e+01 : f32
    %39 = vector.broadcast %cst_17 : f32 to vector<8x1xf32>
    %40 = arith.divf %38, %39 : vector<8x1xf32>
    %41 = vector.broadcast %40 : vector<8x1xf32> to vector<8x32xf32>
    %42 = arith.subf %36, %41 : vector<8x32xf32>
    %43 = arith.mulf %42, %42 : vector<8x32xf32>
    %cst_18 = arith.constant dense<0.000000e+00> : vector<8xf32>
    %44 = vector.multi_reduction <add>, %43, %cst_18 [1] : vector<8x32xf32> to vector<8xf32>
    %45 = vector.shape_cast %44 : vector<8xf32> to vector<8x1xf32>
    %cst_19 = arith.constant 3.200000e+01 : f32
    %46 = vector.broadcast %cst_19 : f32 to vector<8x1xf32>
    %47 = arith.divf %45, %46 : vector<8x1xf32>
    %48 = vector.broadcast %40 : vector<8x1xf32> to vector<8x32xf32>
    %49 = arith.subf %36, %48 : vector<8x32xf32>
    %cst_20 = arith.constant 9.99999974E-6 : f32
    %50 = vector.broadcast %cst_20 : f32 to vector<8x1xf32>
    %51 = arith.addf %47, %50 : vector<8x1xf32>
    %52 = math.rsqrt %51 : vector<8x1xf32>
    %53 = vector.broadcast %52 : vector<8x1xf32> to vector<8x32xf32>
    %54 = arith.mulf %49, %53 : vector<8x32xf32>
    %c4 = arith.constant 4 : index
    %c0_21 = arith.constant 0 : index
    %55 = vector.load %arg3[%c4, %c0_21] : memref<43x48xf32, #tpu.memory_space<vmem>>, vector<1x32xf32>
    %56 = vector.broadcast %55 : vector<1x32xf32> to vector<8x32xf32>
    %57 = arith.mulf %54, %56 : vector<8x32xf32>
    %c5 = arith.constant 5 : index
    %c0_22 = arith.constant 0 : index
    %58 = vector.load %arg3[%c5, %c0_22] : memref<43x48xf32, #tpu.memory_space<vmem>>, vector<1x32xf32>
    %59 = vector.broadcast %58 : vector<1x32xf32> to vector<8x32xf32>
    %60 = arith.addf %57, %59 : vector<8x32xf32>
    %cst_23 = arith.constant 0.000000e+00 : f32
    %61 = vector.broadcast %cst_23 : f32 to vector<8x32xf32>
    %62 = arith.maximumf %60, %61 : vector<8x32xf32>
    %c48 = arith.constant 48 : index
    %c0_24 = arith.constant 0 : index
    %63 = vector.load %arg2[%c48, %c0_24] : memref<472x48xf32, #tpu.memory_space<vmem>>, vector<32x48xf32>
    %c6 = arith.constant 6 : index
    %c0_25 = arith.constant 0 : index
    %64 = vector.load %arg3[%c6, %c0_25] : memref<43x48xf32, #tpu.memory_space<vmem>>, vector<1x48xf32>
    %cst_26 = arith.constant dense<0.000000e+00> : vector<8x48xf32>
    %65 = tpu.matmul %62, %63, %cst_26 {dimension_numbers = #tpu.dot_dimension_numbers<[1], [0], [0], [1], [0, 0, 1, 1], [], []>} : vector<8x32xf32>, vector<32x48xf32>, vector<8x48xf32> -> vector<8x48xf32>
    %66 = vector.broadcast %64 : vector<1x48xf32> to vector<8x48xf32>
    %67 = arith.addf %65, %66 : vector<8x48xf32>
    %cst_27 = arith.constant dense<0.000000e+00> : vector<8xf32>
    %68 = vector.multi_reduction <add>, %67, %cst_27 [1] : vector<8x48xf32> to vector<8xf32>
    %69 = vector.shape_cast %68 : vector<8xf32> to vector<8x1xf32>
    %cst_28 = arith.constant 4.800000e+01 : f32
    %70 = vector.broadcast %cst_28 : f32 to vector<8x1xf32>
    %71 = arith.divf %69, %70 : vector<8x1xf32>
    %72 = vector.broadcast %71 : vector<8x1xf32> to vector<8x48xf32>
    %73 = arith.subf %67, %72 : vector<8x48xf32>
    %74 = arith.mulf %73, %73 : vector<8x48xf32>
    %cst_29 = arith.constant dense<0.000000e+00> : vector<8xf32>
    %75 = vector.multi_reduction <add>, %74, %cst_29 [1] : vector<8x48xf32> to vector<8xf32>
    %76 = vector.shape_cast %75 : vector<8xf32> to vector<8x1xf32>
    %cst_30 = arith.constant 4.800000e+01 : f32
    %77 = vector.broadcast %cst_30 : f32 to vector<8x1xf32>
    %78 = arith.divf %76, %77 : vector<8x1xf32>
    %79 = vector.broadcast %71 : vector<8x1xf32> to vector<8x48xf32>
    %80 = arith.subf %67, %79 : vector<8x48xf32>
    %cst_31 = arith.constant 9.99999974E-6 : f32
    %81 = vector.broadcast %cst_31 : f32 to vector<8x1xf32>
    %82 = arith.addf %78, %81 : vector<8x1xf32>
    %83 = math.rsqrt %82 : vector<8x1xf32>
    %84 = vector.broadcast %83 : vector<8x1xf32> to vector<8x48xf32>
    %85 = arith.mulf %80, %84 : vector<8x48xf32>
    %c7 = arith.constant 7 : index
    %c0_32 = arith.constant 0 : index
    %86 = vector.load %arg3[%c7, %c0_32] : memref<43x48xf32, #tpu.memory_space<vmem>>, vector<1x48xf32>
    %87 = vector.broadcast %86 : vector<1x48xf32> to vector<8x48xf32>
    %88 = arith.mulf %85, %87 : vector<8x48xf32>
    %c8 = arith.constant 8 : index
    %c0_33 = arith.constant 0 : index
    %89 = vector.load %arg3[%c8, %c0_33] : memref<43x48xf32, #tpu.memory_space<vmem>>, vector<1x48xf32>
    %90 = vector.broadcast %89 : vector<1x48xf32> to vector<8x48xf32>
    %91 = arith.addf %88, %90 : vector<8x48xf32>
    %cst_34 = arith.constant 0.000000e+00 : f32
    %92 = vector.broadcast %cst_34 : f32 to vector<8x48xf32>
    %93 = arith.maximumf %91, %92 : vector<8x48xf32>
    %c80 = arith.constant 80 : index
    %c0_35 = arith.constant 0 : index
    %94 = vector.load %arg2[%c80, %c0_35] : memref<472x48xf32, #tpu.memory_space<vmem>>, vector<48x16xf32>
    %c9 = arith.constant 9 : index
    %c0_36 = arith.constant 0 : index
    %95 = vector.load %arg3[%c9, %c0_36] : memref<43x48xf32, #tpu.memory_space<vmem>>, vector<1x16xf32>
    %cst_37 = arith.constant dense<0.000000e+00> : vector<8x16xf32>
    %96 = tpu.matmul %93, %94, %cst_37 {dimension_numbers = #tpu.dot_dimension_numbers<[1], [0], [0], [1], [0, 0, 1, 1], [], []>} : vector<8x48xf32>, vector<48x16xf32>, vector<8x16xf32> -> vector<8x16xf32>
    %97 = vector.broadcast %95 : vector<1x16xf32> to vector<8x16xf32>
    %98 = arith.addf %96, %97 : vector<8x16xf32>
    %cst_38 = arith.constant dense<0.000000e+00> : vector<8xf32>
    %99 = vector.multi_reduction <add>, %98, %cst_38 [1] : vector<8x16xf32> to vector<8xf32>
    %100 = vector.shape_cast %99 : vector<8xf32> to vector<8x1xf32>
    %cst_39 = arith.constant 1.600000e+01 : f32
    %101 = vector.broadcast %cst_39 : f32 to vector<8x1xf32>
    %102 = arith.divf %100, %101 : vector<8x1xf32>
    %103 = vector.broadcast %102 : vector<8x1xf32> to vector<8x16xf32>
    %104 = arith.subf %98, %103 : vector<8x16xf32>
    %105 = arith.mulf %104, %104 : vector<8x16xf32>
    %cst_40 = arith.constant dense<0.000000e+00> : vector<8xf32>
    %106 = vector.multi_reduction <add>, %105, %cst_40 [1] : vector<8x16xf32> to vector<8xf32>
    %107 = vector.shape_cast %106 : vector<8xf32> to vector<8x1xf32>
    %cst_41 = arith.constant 1.600000e+01 : f32
    %108 = vector.broadcast %cst_41 : f32 to vector<8x1xf32>
    %109 = arith.divf %107, %108 : vector<8x1xf32>
    %110 = vector.broadcast %102 : vector<8x1xf32> to vector<8x16xf32>
    %111 = arith.subf %98, %110 : vector<8x16xf32>
    %cst_42 = arith.constant 9.99999974E-6 : f32
    %112 = vector.broadcast %cst_42 : f32 to vector<8x1xf32>
    %113 = arith.addf %109, %112 : vector<8x1xf32>
    %114 = math.rsqrt %113 : vector<8x1xf32>
    %115 = vector.broadcast %114 : vector<8x1xf32> to vector<8x16xf32>
    %116 = arith.mulf %111, %115 : vector<8x16xf32>
    %c10 = arith.constant 10 : index
    %c0_43 = arith.constant 0 : index
    %117 = vector.load %arg3[%c10, %c0_43] : memref<43x48xf32, #tpu.memory_space<vmem>>, vector<1x16xf32>
    %118 = vector.broadcast %117 : vector<1x16xf32> to vector<8x16xf32>
    %119 = arith.mulf %116, %118 : vector<8x16xf32>
    %c11 = arith.constant 11 : index
    %c0_44 = arith.constant 0 : index
    %120 = vector.load %arg3[%c11, %c0_44] : memref<43x48xf32, #tpu.memory_space<vmem>>, vector<1x16xf32>
    %121 = vector.broadcast %120 : vector<1x16xf32> to vector<8x16xf32>
    %122 = arith.addf %119, %121 : vector<8x16xf32>
    %123 = arith.addf %31, %122 : vector<8x16xf32>
    %cst_45 = arith.constant 0.000000e+00 : f32
    %124 = vector.broadcast %cst_45 : f32 to vector<8x16xf32>
    %125 = arith.maximumf %123, %124 : vector<8x16xf32>
    %c128 = arith.constant 128 : index
    %c0_46 = arith.constant 0 : index
    %126 = vector.load %arg2[%c128, %c0_46] : memref<472x48xf32, #tpu.memory_space<vmem>>, vector<16x32xf32>
    %c12 = arith.constant 12 : index
    %c0_47 = arith.constant 0 : index
    %127 = vector.load %arg3[%c12, %c0_47] : memref<43x48xf32, #tpu.memory_space<vmem>>, vector<1x32xf32>
    %cst_48 = arith.constant dense<0.000000e+00> : vector<8x32xf32>
    %128 = tpu.matmul %125, %126, %cst_48 {dimension_numbers = #tpu.dot_dimension_numbers<[1], [0], [0], [1], [0, 0, 1, 1], [], []>} : vector<8x16xf32>, vector<16x32xf32>, vector<8x32xf32> -> vector<8x32xf32>
    %129 = vector.broadcast %127 : vector<1x32xf32> to vector<8x32xf32>
    %130 = arith.addf %128, %129 : vector<8x32xf32>
    %cst_49 = arith.constant dense<0.000000e+00> : vector<8xf32>
    %131 = vector.multi_reduction <add>, %130, %cst_49 [1] : vector<8x32xf32> to vector<8xf32>
    %132 = vector.shape_cast %131 : vector<8xf32> to vector<8x1xf32>
    %cst_50 = arith.constant 3.200000e+01 : f32
    %133 = vector.broadcast %cst_50 : f32 to vector<8x1xf32>
    %134 = arith.divf %132, %133 : vector<8x1xf32>
    %135 = vector.broadcast %134 : vector<8x1xf32> to vector<8x32xf32>
    %136 = arith.subf %130, %135 : vector<8x32xf32>
    %137 = arith.mulf %136, %136 : vector<8x32xf32>
    %cst_51 = arith.constant dense<0.000000e+00> : vector<8xf32>
    %138 = vector.multi_reduction <add>, %137, %cst_51 [1] : vector<8x32xf32> to vector<8xf32>
    %139 = vector.shape_cast %138 : vector<8xf32> to vector<8x1xf32>
    %cst_52 = arith.constant 3.200000e+01 : f32
    %140 = vector.broadcast %cst_52 : f32 to vector<8x1xf32>
    %141 = arith.divf %139, %140 : vector<8x1xf32>
    %142 = vector.broadcast %134 : vector<8x1xf32> to vector<8x32xf32>
    %143 = arith.subf %130, %142 : vector<8x32xf32>
    %cst_53 = arith.constant 9.99999974E-6 : f32
    %144 = vector.broadcast %cst_53 : f32 to vector<8x1xf32>
    %145 = arith.addf %141, %144 : vector<8x1xf32>
    %146 = math.rsqrt %145 : vector<8x1xf32>
    %147 = vector.broadcast %146 : vector<8x1xf32> to vector<8x32xf32>
    %148 = arith.mulf %143, %147 : vector<8x32xf32>
    %c13 = arith.constant 13 : index
    %c0_54 = arith.constant 0 : index
    %149 = vector.load %arg3[%c13, %c0_54] : memref<43x48xf32, #tpu.memory_space<vmem>>, vector<1x32xf32>
    %150 = vector.broadcast %149 : vector<1x32xf32> to vector<8x32xf32>
    %151 = arith.mulf %148, %150 : vector<8x32xf32>
    %c14 = arith.constant 14 : index
    %c0_55 = arith.constant 0 : index
    %152 = vector.load %arg3[%c14, %c0_55] : memref<43x48xf32, #tpu.memory_space<vmem>>, vector<1x32xf32>
    %153 = vector.broadcast %152 : vector<1x32xf32> to vector<8x32xf32>
    %154 = arith.addf %151, %153 : vector<8x32xf32>
    %cst_56 = arith.constant 0.000000e+00 : f32
    %155 = vector.broadcast %cst_56 : f32 to vector<8x32xf32>
    %156 = arith.maximumf %154, %155 : vector<8x32xf32>
    %c144 = arith.constant 144 : index
    %c0_57 = arith.constant 0 : index
    %157 = vector.load %arg2[%c144, %c0_57] : memref<472x48xf32, #tpu.memory_space<vmem>>, vector<32x48xf32>
    %c15 = arith.constant 15 : index
    %c0_58 = arith.constant 0 : index
    %158 = vector.load %arg3[%c15, %c0_58] : memref<43x48xf32, #tpu.memory_space<vmem>>, vector<1x48xf32>
    %cst_59 = arith.constant dense<0.000000e+00> : vector<8x48xf32>
    %159 = tpu.matmul %156, %157, %cst_59 {dimension_numbers = #tpu.dot_dimension_numbers<[1], [0], [0], [1], [0, 0, 1, 1], [], []>} : vector<8x32xf32>, vector<32x48xf32>, vector<8x48xf32> -> vector<8x48xf32>
    %160 = vector.broadcast %158 : vector<1x48xf32> to vector<8x48xf32>
    %161 = arith.addf %159, %160 : vector<8x48xf32>
    %cst_60 = arith.constant dense<0.000000e+00> : vector<8xf32>
    %162 = vector.multi_reduction <add>, %161, %cst_60 [1] : vector<8x48xf32> to vector<8xf32>
    %163 = vector.shape_cast %162 : vector<8xf32> to vector<8x1xf32>
    %cst_61 = arith.constant 4.800000e+01 : f32
    %164 = vector.broadcast %cst_61 : f32 to vector<8x1xf32>
    %165 = arith.divf %163, %164 : vector<8x1xf32>
    %166 = vector.broadcast %165 : vector<8x1xf32> to vector<8x48xf32>
    %167 = arith.subf %161, %166 : vector<8x48xf32>
    %168 = arith.mulf %167, %167 : vector<8x48xf32>
    %cst_62 = arith.constant dense<0.000000e+00> : vector<8xf32>
    %169 = vector.multi_reduction <add>, %168, %cst_62 [1] : vector<8x48xf32> to vector<8xf32>
    %170 = vector.shape_cast %169 : vector<8xf32> to vector<8x1xf32>
    %cst_63 = arith.constant 4.800000e+01 : f32
    %171 = vector.broadcast %cst_63 : f32 to vector<8x1xf32>
    %172 = arith.divf %170, %171 : vector<8x1xf32>
    %173 = vector.broadcast %165 : vector<8x1xf32> to vector<8x48xf32>
    %174 = arith.subf %161, %173 : vector<8x48xf32>
    %cst_64 = arith.constant 9.99999974E-6 : f32
    %175 = vector.broadcast %cst_64 : f32 to vector<8x1xf32>
    %176 = arith.addf %172, %175 : vector<8x1xf32>
    %177 = math.rsqrt %176 : vector<8x1xf32>
    %178 = vector.broadcast %177 : vector<8x1xf32> to vector<8x48xf32>
    %179 = arith.mulf %174, %178 : vector<8x48xf32>
    %c16 = arith.constant 16 : index
    %c0_65 = arith.constant 0 : index
    %180 = vector.load %arg3[%c16, %c0_65] : memref<43x48xf32, #tpu.memory_space<vmem>>, vector<1x48xf32>
    %181 = vector.broadcast %180 : vector<1x48xf32> to vector<8x48xf32>
    %182 = arith.mulf %179, %181 : vector<8x48xf32>
    %c17 = arith.constant 17 : index
    %c0_66 = arith.constant 0 : index
    %183 = vector.load %arg3[%c17, %c0_66] : memref<43x48xf32, #tpu.memory_space<vmem>>, vector<1x48xf32>
    %184 = vector.broadcast %183 : vector<1x48xf32> to vector<8x48xf32>
    %185 = arith.addf %182, %184 : vector<8x48xf32>
    %cst_67 = arith.constant 0.000000e+00 : f32
    %186 = vector.broadcast %cst_67 : f32 to vector<8x48xf32>
    %187 = arith.maximumf %185, %186 : vector<8x48xf32>
    %c176 = arith.constant 176 : index
    %c0_68 = arith.constant 0 : index
    %188 = vector.load %arg2[%c176, %c0_68] : memref<472x48xf32, #tpu.memory_space<vmem>>, vector<48x16xf32>
    %c18 = arith.constant 18 : index
    %c0_69 = arith.constant 0 : index
    %189 = vector.load %arg3[%c18, %c0_69] : memref<43x48xf32, #tpu.memory_space<vmem>>, vector<1x16xf32>
    %cst_70 = arith.constant dense<0.000000e+00> : vector<8x16xf32>
    %190 = tpu.matmul %187, %188, %cst_70 {dimension_numbers = #tpu.dot_dimension_numbers<[1], [0], [0], [1], [0, 0, 1, 1], [], []>} : vector<8x48xf32>, vector<48x16xf32>, vector<8x16xf32> -> vector<8x16xf32>
    %191 = vector.broadcast %189 : vector<1x16xf32> to vector<8x16xf32>
    %192 = arith.addf %190, %191 : vector<8x16xf32>
    %cst_71 = arith.constant dense<0.000000e+00> : vector<8xf32>
    %193 = vector.multi_reduction <add>, %192, %cst_71 [1] : vector<8x16xf32> to vector<8xf32>
    %194 = vector.shape_cast %193 : vector<8xf32> to vector<8x1xf32>
    %cst_72 = arith.constant 1.600000e+01 : f32
    %195 = vector.broadcast %cst_72 : f32 to vector<8x1xf32>
    %196 = arith.divf %194, %195 : vector<8x1xf32>
    %197 = vector.broadcast %196 : vector<8x1xf32> to vector<8x16xf32>
    %198 = arith.subf %192, %197 : vector<8x16xf32>
    %199 = arith.mulf %198, %198 : vector<8x16xf32>
    %cst_73 = arith.constant dense<0.000000e+00> : vector<8xf32>
    %200 = vector.multi_reduction <add>, %199, %cst_73 [1] : vector<8x16xf32> to vector<8xf32>
    %201 = vector.shape_cast %200 : vector<8xf32> to vector<8x1xf32>
    %cst_74 = arith.constant 1.600000e+01 : f32
    %202 = vector.broadcast %cst_74 : f32 to vector<8x1xf32>
    %203 = arith.divf %201, %202 : vector<8x1xf32>
    %204 = vector.broadcast %196 : vector<8x1xf32> to vector<8x16xf32>
    %205 = arith.subf %192, %204 : vector<8x16xf32>
    %cst_75 = arith.constant 9.99999974E-6 : f32
    %206 = vector.broadcast %cst_75 : f32 to vector<8x1xf32>
    %207 = arith.addf %203, %206 : vector<8x1xf32>
    %208 = math.rsqrt %207 : vector<8x1xf32>
    %209 = vector.broadcast %208 : vector<8x1xf32> to vector<8x16xf32>
    %210 = arith.mulf %205, %209 : vector<8x16xf32>
    %c19 = arith.constant 19 : index
    %c0_76 = arith.constant 0 : index
    %211 = vector.load %arg3[%c19, %c0_76] : memref<43x48xf32, #tpu.memory_space<vmem>>, vector<1x16xf32>
    %212 = vector.broadcast %211 : vector<1x16xf32> to vector<8x16xf32>
    %213 = arith.mulf %210, %212 : vector<8x16xf32>
    %c20 = arith.constant 20 : index
    %c0_77 = arith.constant 0 : index
    %214 = vector.load %arg3[%c20, %c0_77] : memref<43x48xf32, #tpu.memory_space<vmem>>, vector<1x16xf32>
    %215 = vector.broadcast %214 : vector<1x16xf32> to vector<8x16xf32>
    %216 = arith.addf %213, %215 : vector<8x16xf32>
    %217 = arith.addf %125, %216 : vector<8x16xf32>
    %cst_78 = arith.constant 0.000000e+00 : f32
    %218 = vector.broadcast %cst_78 : f32 to vector<8x16xf32>
    %219 = arith.maximumf %217, %218 : vector<8x16xf32>
    %c224 = arith.constant 224 : index
    %c0_79 = arith.constant 0 : index
    %220 = vector.load %arg2[%c224, %c0_79] : memref<472x48xf32, #tpu.memory_space<vmem>>, vector<16x32xf32>
    %c21 = arith.constant 21 : index
    %c0_80 = arith.constant 0 : index
    %221 = vector.load %arg3[%c21, %c0_80] : memref<43x48xf32, #tpu.memory_space<vmem>>, vector<1x32xf32>
    %cst_81 = arith.constant dense<0.000000e+00> : vector<8x32xf32>
    %222 = tpu.matmul %219, %220, %cst_81 {dimension_numbers = #tpu.dot_dimension_numbers<[1], [0], [0], [1], [0, 0, 1, 1], [], []>} : vector<8x16xf32>, vector<16x32xf32>, vector<8x32xf32> -> vector<8x32xf32>
    %223 = vector.broadcast %221 : vector<1x32xf32> to vector<8x32xf32>
    %224 = arith.addf %222, %223 : vector<8x32xf32>
    %cst_82 = arith.constant dense<0.000000e+00> : vector<8xf32>
    %225 = vector.multi_reduction <add>, %224, %cst_82 [1] : vector<8x32xf32> to vector<8xf32>
    %226 = vector.shape_cast %225 : vector<8xf32> to vector<8x1xf32>
    %cst_83 = arith.constant 3.200000e+01 : f32
    %227 = vector.broadcast %cst_83 : f32 to vector<8x1xf32>
    %228 = arith.divf %226, %227 : vector<8x1xf32>
    %229 = vector.broadcast %228 : vector<8x1xf32> to vector<8x32xf32>
    %230 = arith.subf %224, %229 : vector<8x32xf32>
    %231 = arith.mulf %230, %230 : vector<8x32xf32>
    %cst_84 = arith.constant dense<0.000000e+00> : vector<8xf32>
    %232 = vector.multi_reduction <add>, %231, %cst_84 [1] : vector<8x32xf32> to vector<8xf32>
    %233 = vector.shape_cast %232 : vector<8xf32> to vector<8x1xf32>
    %cst_85 = arith.constant 3.200000e+01 : f32
    %234 = vector.broadcast %cst_85 : f32 to vector<8x1xf32>
    %235 = arith.divf %233, %234 : vector<8x1xf32>
    %236 = vector.broadcast %228 : vector<8x1xf32> to vector<8x32xf32>
    %237 = arith.subf %224, %236 : vector<8x32xf32>
    %cst_86 = arith.constant 9.99999974E-6 : f32
    %238 = vector.broadcast %cst_86 : f32 to vector<8x1xf32>
    %239 = arith.addf %235, %238 : vector<8x1xf32>
    %240 = math.rsqrt %239 : vector<8x1xf32>
    %241 = vector.broadcast %240 : vector<8x1xf32> to vector<8x32xf32>
    %242 = arith.mulf %237, %241 : vector<8x32xf32>
    %c22 = arith.constant 22 : index
    %c0_87 = arith.constant 0 : index
    %243 = vector.load %arg3[%c22, %c0_87] : memref<43x48xf32, #tpu.memory_space<vmem>>, vector<1x32xf32>
    %244 = vector.broadcast %243 : vector<1x32xf32> to vector<8x32xf32>
    %245 = arith.mulf %242, %244 : vector<8x32xf32>
    %c23 = arith.constant 23 : index
    %c0_88 = arith.constant 0 : index
    %246 = vector.load %arg3[%c23, %c0_88] : memref<43x48xf32, #tpu.memory_space<vmem>>, vector<1x32xf32>
    %247 = vector.broadcast %246 : vector<1x32xf32> to vector<8x32xf32>
    %248 = arith.addf %245, %247 : vector<8x32xf32>
    %cst_89 = arith.constant 0.000000e+00 : f32
    %249 = vector.broadcast %cst_89 : f32 to vector<8x32xf32>
    %250 = arith.maximumf %248, %249 : vector<8x32xf32>
    %c240 = arith.constant 240 : index
    %c0_90 = arith.constant 0 : index
    %251 = vector.load %arg2[%c240, %c0_90] : memref<472x48xf32, #tpu.memory_space<vmem>>, vector<32x48xf32>
    %c24 = arith.constant 24 : index
    %c0_91 = arith.constant 0 : index
    %252 = vector.load %arg3[%c24, %c0_91] : memref<43x48xf32, #tpu.memory_space<vmem>>, vector<1x48xf32>
    %cst_92 = arith.constant dense<0.000000e+00> : vector<8x48xf32>
    %253 = tpu.matmul %250, %251, %cst_92 {dimension_numbers = #tpu.dot_dimension_numbers<[1], [0], [0], [1], [0, 0, 1, 1], [], []>} : vector<8x32xf32>, vector<32x48xf32>, vector<8x48xf32> -> vector<8x48xf32>
    %254 = vector.broadcast %252 : vector<1x48xf32> to vector<8x48xf32>
    %255 = arith.addf %253, %254 : vector<8x48xf32>
    %cst_93 = arith.constant dense<0.000000e+00> : vector<8xf32>
    %256 = vector.multi_reduction <add>, %255, %cst_93 [1] : vector<8x48xf32> to vector<8xf32>
    %257 = vector.shape_cast %256 : vector<8xf32> to vector<8x1xf32>
    %cst_94 = arith.constant 4.800000e+01 : f32
    %258 = vector.broadcast %cst_94 : f32 to vector<8x1xf32>
    %259 = arith.divf %257, %258 : vector<8x1xf32>
    %260 = vector.broadcast %259 : vector<8x1xf32> to vector<8x48xf32>
    %261 = arith.subf %255, %260 : vector<8x48xf32>
    %262 = arith.mulf %261, %261 : vector<8x48xf32>
    %cst_95 = arith.constant dense<0.000000e+00> : vector<8xf32>
    %263 = vector.multi_reduction <add>, %262, %cst_95 [1] : vector<8x48xf32> to vector<8xf32>
    %264 = vector.shape_cast %263 : vector<8xf32> to vector<8x1xf32>
    %cst_96 = arith.constant 4.800000e+01 : f32
    %265 = vector.broadcast %cst_96 : f32 to vector<8x1xf32>
    %266 = arith.divf %264, %265 : vector<8x1xf32>
    %267 = vector.broadcast %259 : vector<8x1xf32> to vector<8x48xf32>
    %268 = arith.subf %255, %267 : vector<8x48xf32>
    %cst_97 = arith.constant 9.99999974E-6 : f32
    %269 = vector.broadcast %cst_97 : f32 to vector<8x1xf32>
    %270 = arith.addf %266, %269 : vector<8x1xf32>
    %271 = math.rsqrt %270 : vector<8x1xf32>
    %272 = vector.broadcast %271 : vector<8x1xf32> to vector<8x48xf32>
    %273 = arith.mulf %268, %272 : vector<8x48xf32>
    %c25 = arith.constant 25 : index
    %c0_98 = arith.constant 0 : index
    %274 = vector.load %arg3[%c25, %c0_98] : memref<43x48xf32, #tpu.memory_space<vmem>>, vector<1x48xf32>
    %275 = vector.broadcast %274 : vector<1x48xf32> to vector<8x48xf32>
    %276 = arith.mulf %273, %275 : vector<8x48xf32>
    %c26 = arith.constant 26 : index
    %c0_99 = arith.constant 0 : index
    %277 = vector.load %arg3[%c26, %c0_99] : memref<43x48xf32, #tpu.memory_space<vmem>>, vector<1x48xf32>
    %278 = vector.broadcast %277 : vector<1x48xf32> to vector<8x48xf32>
    %279 = arith.addf %276, %278 : vector<8x48xf32>
    %cst_100 = arith.constant 0.000000e+00 : f32
    %280 = vector.broadcast %cst_100 : f32 to vector<8x48xf32>
    %281 = arith.maximumf %279, %280 : vector<8x48xf32>
    %c272 = arith.constant 272 : index
    %c0_101 = arith.constant 0 : index
    %282 = vector.load %arg2[%c272, %c0_101] : memref<472x48xf32, #tpu.memory_space<vmem>>, vector<48x16xf32>
    %c27 = arith.constant 27 : index
    %c0_102 = arith.constant 0 : index
    %283 = vector.load %arg3[%c27, %c0_102] : memref<43x48xf32, #tpu.memory_space<vmem>>, vector<1x16xf32>
    %cst_103 = arith.constant dense<0.000000e+00> : vector<8x16xf32>
    %284 = tpu.matmul %281, %282, %cst_103 {dimension_numbers = #tpu.dot_dimension_numbers<[1], [0], [0], [1], [0, 0, 1, 1], [], []>} : vector<8x48xf32>, vector<48x16xf32>, vector<8x16xf32> -> vector<8x16xf32>
    %285 = vector.broadcast %283 : vector<1x16xf32> to vector<8x16xf32>
    %286 = arith.addf %284, %285 : vector<8x16xf32>
    %cst_104 = arith.constant dense<0.000000e+00> : vector<8xf32>
    %287 = vector.multi_reduction <add>, %286, %cst_104 [1] : vector<8x16xf32> to vector<8xf32>
    %288 = vector.shape_cast %287 : vector<8xf32> to vector<8x1xf32>
    %cst_105 = arith.constant 1.600000e+01 : f32
    %289 = vector.broadcast %cst_105 : f32 to vector<8x1xf32>
    %290 = arith.divf %288, %289 : vector<8x1xf32>
    %291 = vector.broadcast %290 : vector<8x1xf32> to vector<8x16xf32>
    %292 = arith.subf %286, %291 : vector<8x16xf32>
    %293 = arith.mulf %292, %292 : vector<8x16xf32>
    %cst_106 = arith.constant dense<0.000000e+00> : vector<8xf32>
    %294 = vector.multi_reduction <add>, %293, %cst_106 [1] : vector<8x16xf32> to vector<8xf32>
    %295 = vector.shape_cast %294 : vector<8xf32> to vector<8x1xf32>
    %cst_107 = arith.constant 1.600000e+01 : f32
    %296 = vector.broadcast %cst_107 : f32 to vector<8x1xf32>
    %297 = arith.divf %295, %296 : vector<8x1xf32>
    %298 = vector.broadcast %290 : vector<8x1xf32> to vector<8x16xf32>
    %299 = arith.subf %286, %298 : vector<8x16xf32>
    %cst_108 = arith.constant 9.99999974E-6 : f32
    %300 = vector.broadcast %cst_108 : f32 to vector<8x1xf32>
    %301 = arith.addf %297, %300 : vector<8x1xf32>
    %302 = math.rsqrt %301 : vector<8x1xf32>
    %303 = vector.broadcast %302 : vector<8x1xf32> to vector<8x16xf32>
    %304 = arith.mulf %299, %303 : vector<8x16xf32>
    %c28 = arith.constant 28 : index
    %c0_109 = arith.constant 0 : index
    %305 = vector.load %arg3[%c28, %c0_109] : memref<43x48xf32, #tpu.memory_space<vmem>>, vector<1x16xf32>
    %306 = vector.broadcast %305 : vector<1x16xf32> to vector<8x16xf32>
    %307 = arith.mulf %304, %306 : vector<8x16xf32>
    %c29 = arith.constant 29 : index
    %c0_110 = arith.constant 0 : index
    %308 = vector.load %arg3[%c29, %c0_110] : memref<43x48xf32, #tpu.memory_space<vmem>>, vector<1x16xf32>
    %309 = vector.broadcast %308 : vector<1x16xf32> to vector<8x16xf32>
    %310 = arith.addf %307, %309 : vector<8x16xf32>
    %311 = arith.addf %219, %310 : vector<8x16xf32>
    %cst_111 = arith.constant 0.000000e+00 : f32
    %312 = vector.broadcast %cst_111 : f32 to vector<8x16xf32>
    %313 = arith.maximumf %311, %312 : vector<8x16xf32>
    %c320 = arith.constant 320 : index
    %c0_112 = arith.constant 0 : index
    %314 = vector.load %arg2[%c320, %c0_112] : memref<472x48xf32, #tpu.memory_space<vmem>>, vector<16x32xf32>
    %c30 = arith.constant 30 : index
    %c0_113 = arith.constant 0 : index
    %315 = vector.load %arg3[%c30, %c0_113] : memref<43x48xf32, #tpu.memory_space<vmem>>, vector<1x32xf32>
    %cst_114 = arith.constant dense<0.000000e+00> : vector<8x32xf32>
    %316 = tpu.matmul %313, %314, %cst_114 {dimension_numbers = #tpu.dot_dimension_numbers<[1], [0], [0], [1], [0, 0, 1, 1], [], []>} : vector<8x16xf32>, vector<16x32xf32>, vector<8x32xf32> -> vector<8x32xf32>
    %317 = vector.broadcast %315 : vector<1x32xf32> to vector<8x32xf32>
    %318 = arith.addf %316, %317 : vector<8x32xf32>
    %cst_115 = arith.constant dense<0.000000e+00> : vector<8xf32>
    %319 = vector.multi_reduction <add>, %318, %cst_115 [1] : vector<8x32xf32> to vector<8xf32>
    %320 = vector.shape_cast %319 : vector<8xf32> to vector<8x1xf32>
    %cst_116 = arith.constant 3.200000e+01 : f32
    %321 = vector.broadcast %cst_116 : f32 to vector<8x1xf32>
    %322 = arith.divf %320, %321 : vector<8x1xf32>
    %323 = vector.broadcast %322 : vector<8x1xf32> to vector<8x32xf32>
    %324 = arith.subf %318, %323 : vector<8x32xf32>
    %325 = arith.mulf %324, %324 : vector<8x32xf32>
    %cst_117 = arith.constant dense<0.000000e+00> : vector<8xf32>
    %326 = vector.multi_reduction <add>, %325, %cst_117 [1] : vector<8x32xf32> to vector<8xf32>
    %327 = vector.shape_cast %326 : vector<8xf32> to vector<8x1xf32>
    %cst_118 = arith.constant 3.200000e+01 : f32
    %328 = vector.broadcast %cst_118 : f32 to vector<8x1xf32>
    %329 = arith.divf %327, %328 : vector<8x1xf32>
    %330 = vector.broadcast %322 : vector<8x1xf32> to vector<8x32xf32>
    %331 = arith.subf %318, %330 : vector<8x32xf32>
    %cst_119 = arith.constant 9.99999974E-6 : f32
    %332 = vector.broadcast %cst_119 : f32 to vector<8x1xf32>
    %333 = arith.addf %329, %332 : vector<8x1xf32>
    %334 = math.rsqrt %333 : vector<8x1xf32>
    %335 = vector.broadcast %334 : vector<8x1xf32> to vector<8x32xf32>
    %336 = arith.mulf %331, %335 : vector<8x32xf32>
    %c31 = arith.constant 31 : index
    %c0_120 = arith.constant 0 : index
    %337 = vector.load %arg3[%c31, %c0_120] : memref<43x48xf32, #tpu.memory_space<vmem>>, vector<1x32xf32>
    %338 = vector.broadcast %337 : vector<1x32xf32> to vector<8x32xf32>
    %339 = arith.mulf %336, %338 : vector<8x32xf32>
    %c32_121 = arith.constant 32 : index
    %c0_122 = arith.constant 0 : index
    %340 = vector.load %arg3[%c32_121, %c0_122] : memref<43x48xf32, #tpu.memory_space<vmem>>, vector<1x32xf32>
    %341 = vector.broadcast %340 : vector<1x32xf32> to vector<8x32xf32>
    %342 = arith.addf %339, %341 : vector<8x32xf32>
    %cst_123 = arith.constant 0.000000e+00 : f32
    %343 = vector.broadcast %cst_123 : f32 to vector<8x32xf32>
    %344 = arith.maximumf %342, %343 : vector<8x32xf32>
    %c336 = arith.constant 336 : index
    %c0_124 = arith.constant 0 : index
    %345 = vector.load %arg2[%c336, %c0_124] : memref<472x48xf32, #tpu.memory_space<vmem>>, vector<32x48xf32>
    %c33 = arith.constant 33 : index
    %c0_125 = arith.constant 0 : index
    %346 = vector.load %arg3[%c33, %c0_125] : memref<43x48xf32, #tpu.memory_space<vmem>>, vector<1x48xf32>
    %cst_126 = arith.constant dense<0.000000e+00> : vector<8x48xf32>
    %347 = tpu.matmul %344, %345, %cst_126 {dimension_numbers = #tpu.dot_dimension_numbers<[1], [0], [0], [1], [0, 0, 1, 1], [], []>} : vector<8x32xf32>, vector<32x48xf32>, vector<8x48xf32> -> vector<8x48xf32>
    %348 = vector.broadcast %346 : vector<1x48xf32> to vector<8x48xf32>
    %349 = arith.addf %347, %348 : vector<8x48xf32>
    %cst_127 = arith.constant dense<0.000000e+00> : vector<8xf32>
    %350 = vector.multi_reduction <add>, %349, %cst_127 [1] : vector<8x48xf32> to vector<8xf32>
    %351 = vector.shape_cast %350 : vector<8xf32> to vector<8x1xf32>
    %cst_128 = arith.constant 4.800000e+01 : f32
    %352 = vector.broadcast %cst_128 : f32 to vector<8x1xf32>
    %353 = arith.divf %351, %352 : vector<8x1xf32>
    %354 = vector.broadcast %353 : vector<8x1xf32> to vector<8x48xf32>
    %355 = arith.subf %349, %354 : vector<8x48xf32>
    %356 = arith.mulf %355, %355 : vector<8x48xf32>
    %cst_129 = arith.constant dense<0.000000e+00> : vector<8xf32>
    %357 = vector.multi_reduction <add>, %356, %cst_129 [1] : vector<8x48xf32> to vector<8xf32>
    %358 = vector.shape_cast %357 : vector<8xf32> to vector<8x1xf32>
    %cst_130 = arith.constant 4.800000e+01 : f32
    %359 = vector.broadcast %cst_130 : f32 to vector<8x1xf32>
    %360 = arith.divf %358, %359 : vector<8x1xf32>
    %361 = vector.broadcast %353 : vector<8x1xf32> to vector<8x48xf32>
    %362 = arith.subf %349, %361 : vector<8x48xf32>
    %cst_131 = arith.constant 9.99999974E-6 : f32
    %363 = vector.broadcast %cst_131 : f32 to vector<8x1xf32>
    %364 = arith.addf %360, %363 : vector<8x1xf32>
    %365 = math.rsqrt %364 : vector<8x1xf32>
    %366 = vector.broadcast %365 : vector<8x1xf32> to vector<8x48xf32>
    %367 = arith.mulf %362, %366 : vector<8x48xf32>
    %c34 = arith.constant 34 : index
    %c0_132 = arith.constant 0 : index
    %368 = vector.load %arg3[%c34, %c0_132] : memref<43x48xf32, #tpu.memory_space<vmem>>, vector<1x48xf32>
    %369 = vector.broadcast %368 : vector<1x48xf32> to vector<8x48xf32>
    %370 = arith.mulf %367, %369 : vector<8x48xf32>
    %c35 = arith.constant 35 : index
    %c0_133 = arith.constant 0 : index
    %371 = vector.load %arg3[%c35, %c0_133] : memref<43x48xf32, #tpu.memory_space<vmem>>, vector<1x48xf32>
    %372 = vector.broadcast %371 : vector<1x48xf32> to vector<8x48xf32>
    %373 = arith.addf %370, %372 : vector<8x48xf32>
    %cst_134 = arith.constant 0.000000e+00 : f32
    %374 = vector.broadcast %cst_134 : f32 to vector<8x48xf32>
    %375 = arith.maximumf %373, %374 : vector<8x48xf32>
    %c368 = arith.constant 368 : index
    %c0_135 = arith.constant 0 : index
    %376 = vector.load %arg2[%c368, %c0_135] : memref<472x48xf32, #tpu.memory_space<vmem>>, vector<48x16xf32>
    %c36 = arith.constant 36 : index
    %c0_136 = arith.constant 0 : index
    %377 = vector.load %arg3[%c36, %c0_136] : memref<43x48xf32, #tpu.memory_space<vmem>>, vector<1x16xf32>
    %cst_137 = arith.constant dense<0.000000e+00> : vector<8x16xf32>
    %378 = tpu.matmul %375, %376, %cst_137 {dimension_numbers = #tpu.dot_dimension_numbers<[1], [0], [0], [1], [0, 0, 1, 1], [], []>} : vector<8x48xf32>, vector<48x16xf32>, vector<8x16xf32> -> vector<8x16xf32>
    %379 = vector.broadcast %377 : vector<1x16xf32> to vector<8x16xf32>
    %380 = arith.addf %378, %379 : vector<8x16xf32>
    %cst_138 = arith.constant dense<0.000000e+00> : vector<8xf32>
    %381 = vector.multi_reduction <add>, %380, %cst_138 [1] : vector<8x16xf32> to vector<8xf32>
    %382 = vector.shape_cast %381 : vector<8xf32> to vector<8x1xf32>
    %cst_139 = arith.constant 1.600000e+01 : f32
    %383 = vector.broadcast %cst_139 : f32 to vector<8x1xf32>
    %384 = arith.divf %382, %383 : vector<8x1xf32>
    %385 = vector.broadcast %384 : vector<8x1xf32> to vector<8x16xf32>
    %386 = arith.subf %380, %385 : vector<8x16xf32>
    %387 = arith.mulf %386, %386 : vector<8x16xf32>
    %cst_140 = arith.constant dense<0.000000e+00> : vector<8xf32>
    %388 = vector.multi_reduction <add>, %387, %cst_140 [1] : vector<8x16xf32> to vector<8xf32>
    %389 = vector.shape_cast %388 : vector<8xf32> to vector<8x1xf32>
    %cst_141 = arith.constant 1.600000e+01 : f32
    %390 = vector.broadcast %cst_141 : f32 to vector<8x1xf32>
    %391 = arith.divf %389, %390 : vector<8x1xf32>
    %392 = vector.broadcast %384 : vector<8x1xf32> to vector<8x16xf32>
    %393 = arith.subf %380, %392 : vector<8x16xf32>
    %cst_142 = arith.constant 9.99999974E-6 : f32
    %394 = vector.broadcast %cst_142 : f32 to vector<8x1xf32>
    %395 = arith.addf %391, %394 : vector<8x1xf32>
    %396 = math.rsqrt %395 : vector<8x1xf32>
    %397 = vector.broadcast %396 : vector<8x1xf32> to vector<8x16xf32>
    %398 = arith.mulf %393, %397 : vector<8x16xf32>
    %c37 = arith.constant 37 : index
    %c0_143 = arith.constant 0 : index
    %399 = vector.load %arg3[%c37, %c0_143] : memref<43x48xf32, #tpu.memory_space<vmem>>, vector<1x16xf32>
    %400 = vector.broadcast %399 : vector<1x16xf32> to vector<8x16xf32>
    %401 = arith.mulf %398, %400 : vector<8x16xf32>
    %c38 = arith.constant 38 : index
    %c0_144 = arith.constant 0 : index
    %402 = vector.load %arg3[%c38, %c0_144] : memref<43x48xf32, #tpu.memory_space<vmem>>, vector<1x16xf32>
    %403 = vector.broadcast %402 : vector<1x16xf32> to vector<8x16xf32>
    %404 = arith.addf %401, %403 : vector<8x16xf32>
    %405 = arith.addf %313, %404 : vector<8x16xf32>
    %cst_145 = arith.constant 0.000000e+00 : f32
    %406 = vector.broadcast %cst_145 : f32 to vector<8x16xf32>
    %407 = arith.maximumf %405, %406 : vector<8x16xf32>
    %c416 = arith.constant 416 : index
    %c0_146 = arith.constant 0 : index
    %408 = vector.load %arg2[%c416, %c0_146] : memref<472x48xf32, #tpu.memory_space<vmem>>, vector<16x8xf32>
    %c39 = arith.constant 39 : index
    %c0_147 = arith.constant 0 : index
    %409 = vector.load %arg3[%c39, %c0_147] : memref<43x48xf32, #tpu.memory_space<vmem>>, vector<1x8xf32>
    %cst_148 = arith.constant dense<0.000000e+00> : vector<8x8xf32>
    %410 = tpu.matmul %407, %408, %cst_148 {dimension_numbers = #tpu.dot_dimension_numbers<[1], [0], [0], [1], [0, 0, 1, 1], [], []>} : vector<8x16xf32>, vector<16x8xf32>, vector<8x8xf32> -> vector<8x8xf32>
    %411 = vector.broadcast %409 : vector<1x8xf32> to vector<8x8xf32>
    %412 = arith.addf %410, %411 : vector<8x8xf32>
    %cst_149 = arith.constant 0.000000e+00 : f32
    %413 = vector.broadcast %cst_149 : f32 to vector<8x8xf32>
    %414 = arith.maximumf %412, %413 : vector<8x8xf32>
    %c432 = arith.constant 432 : index
    %c0_150 = arith.constant 0 : index
    %415 = vector.load %arg2[%c432, %c0_150] : memref<472x48xf32, #tpu.memory_space<vmem>>, vector<8x16xf32>
    %c40 = arith.constant 40 : index
    %c0_151 = arith.constant 0 : index
    %416 = vector.load %arg3[%c40, %c0_151] : memref<43x48xf32, #tpu.memory_space<vmem>>, vector<1x16xf32>
    %cst_152 = arith.constant dense<0.000000e+00> : vector<8x16xf32>
    %417 = tpu.matmul %414, %415, %cst_152 {dimension_numbers = #tpu.dot_dimension_numbers<[1], [0], [0], [1], [0, 0, 1, 1], [], []>} : vector<8x8xf32>, vector<8x16xf32>, vector<8x16xf32> -> vector<8x16xf32>
    %418 = vector.broadcast %416 : vector<1x16xf32> to vector<8x16xf32>
    %419 = arith.addf %417, %418 : vector<8x16xf32>
    %420 = arith.addf %407, %419 : vector<8x16xf32>
    %cst_153 = arith.constant 0.000000e+00 : f32
    %421 = vector.broadcast %cst_153 : f32 to vector<8x16xf32>
    %422 = arith.maximumf %420, %421 : vector<8x16xf32>
    %c440 = arith.constant 440 : index
    %c0_154 = arith.constant 0 : index
    %423 = vector.load %arg2[%c440, %c0_154] : memref<472x48xf32, #tpu.memory_space<vmem>>, vector<16x16xf32>
    %c41 = arith.constant 41 : index
    %c0_155 = arith.constant 0 : index
    %424 = vector.load %arg3[%c41, %c0_155] : memref<43x48xf32, #tpu.memory_space<vmem>>, vector<1x16xf32>
    %cst_156 = arith.constant dense<0.000000e+00> : vector<8x16xf32>
    %425 = tpu.matmul %422, %423, %cst_156 {dimension_numbers = #tpu.dot_dimension_numbers<[1], [0], [0], [1], [0, 0, 1, 1], [], []>} : vector<8x16xf32>, vector<16x16xf32>, vector<8x16xf32> -> vector<8x16xf32>
    %426 = vector.broadcast %424 : vector<1x16xf32> to vector<8x16xf32>
    %427 = arith.addf %425, %426 : vector<8x16xf32>
    %cst_157 = arith.constant 0.000000e+00 : f32
    %428 = vector.broadcast %cst_157 : f32 to vector<8x16xf32>
    %429 = arith.maximumf %427, %428 : vector<8x16xf32>
    %c456 = arith.constant 456 : index
    %c0_158 = arith.constant 0 : index
    %430 = vector.load %arg2[%c456, %c0_158] : memref<472x48xf32, #tpu.memory_space<vmem>>, vector<16x1xf32>
    %c42 = arith.constant 42 : index
    %c0_159 = arith.constant 0 : index
    %431 = vector.load %arg3[%c42, %c0_159] : memref<43x48xf32, #tpu.memory_space<vmem>>, vector<1x1xf32>
    %cst_160 = arith.constant dense<0.000000e+00> : vector<8x1xf32>
    %432 = tpu.matmul %429, %430, %cst_160 {dimension_numbers = #tpu.dot_dimension_numbers<[1], [0], [0], [1], [0, 0, 1, 1], [], []>} : vector<8x16xf32>, vector<16x1xf32>, vector<8x1xf32> -> vector<8x1xf32>
    %433 = vector.broadcast %431 : vector<1x1xf32> to vector<8x1xf32>
    %434 = arith.addf %432, %433 : vector<8x1xf32>
    %435 = vector.shape_cast %434 : vector<8x1xf32> to vector<8x1xf32>
    %436 = vector.broadcast %435 : vector<8x1xf32> to vector<8x128xf32>
    %c0_161 = arith.constant 0 : index
    %c0_162 = arith.constant 0 : index
    %437 = vector.load %arg4[%c0_161, %c0_162] : memref<8x128xf32, #tpu.memory_space<vmem>>, vector<8x128xf32>
    tpu.vector_store %arg4[%c0_161, %c0_162], %436 {strides = array<i32>} : memref<8x128xf32, #tpu.memory_space<vmem>>, vector<8x128xf32>,
    return
  }
  func.func @transform_0(%arg0: i32) -> (i32, i32) {
    %c0_i32 = arith.constant 0 : i32
    %c0_i32_0 = arith.constant 0 : i32
    return %arg0, %c0_i32 : i32, i32
  }
  func.func @transform_1(%arg0: i32) -> (i32, i32) {
    %c0_i32 = arith.constant 0 : i32
    %c0_i32_0 = arith.constant 0 : i32
    %c0_i32_1 = arith.constant 0 : i32
    return %c0_i32, %c0_i32_0 : i32, i32
  }
  func.func @transform_2(%arg0: i32) -> (i32, i32) {
    %c0_i32 = arith.constant 0 : i32
    %c0_i32_0 = arith.constant 0 : i32
    %c0_i32_1 = arith.constant 0 : i32
    return %c0_i32, %c0_i32_0 : i32, i32
  }
  func.func @transform_3(%arg0: i32) -> (i32, i32) {
    %c0_i32 = arith.constant 0 : i32
    %c0_i32_0 = arith.constant 0 : i32
    return %arg0, %c0_i32 : i32, i32
  }
}

</mosaic_0001>

<bundles_post_ra>
// kernel: tpu_custom_call.1
= control target key start
LH: loop header
LB: loop body
LE: loop exit
PB: predicated region body
PF: predicated region fallthrough
CT: control target
= control target key end

     0   :  { %vm22_vm0 = vcmask 261120   ;;  %s1496_s0 = inlined_call_operand.vmem [shape: f32[8,32], index: 0, kind: input, shape index: {}]   ;;  %s1497_s1 = inlined_call_operand.vmem [shape: f32[472,48], index: 1, kind: input, shape index: {}]   ;;  %s1498_s2 = inlined_call_operand.vmem [shape: f32[43,48], index: 2, kind: input, shape index: {}]   ;;  %s1499_s3 = inlined_call_operand.hbm [shape: f32[8,128], index: 3, kind: output, shape index: {}]  }
   0x1   :  { %v19_v0 = vld [vmem:[%s1497_s1 + $0x18] sm:$0xff]  ;;  %v18_v1 = vld [vmem:[%s1497_s1 + $0x10] sm:$0xff]  ;;  %v17_v2 = vld [vmem:[%s1497_s1 + $0x8] sm:$0xff] }
   0x2   :  { %38 = vmatpush.msra.mxu0 %v19_v0  ;;  %v16_v3 = vld [vmem:[%s1497_s1] sm:$0xff] }
   0x3   :  { %v15_v4 = vld [vmem:[%s1496_s0] sm:$0xff] }
   0x4   :  { %39 = vmatpush.msra.mxu0 %v18_v1 }
   0x6   :  { %40 = vmatpush.msra.mxu0 %v17_v2 }
   0x8   :  { %41 = vmatpush.msra.mxu0 %v16_v3 }
   0x9   :  { %932 = vmatmul.msk.f32.vlgmr.msra.gmra.mxu0 %vm22_vm0, %v15_v4 }
   0xa   :  { %8 = vsyncpa [#allocation3], 0  ;;  %v956_v5 = vld [vmem:[%s1498_s2] ss:$0 sm:$0xff]  ;;  %vm46_vm1 = vcmask 130048   ;;  %v1057_v9 = vmov 16.0  }
   0xb   :  { %999 = vrcp.f32 %v1057_v9  ;;  %v84_v21 = vld [vmem:[%s1497_s1 + $0x28] sm:$0xff]  ;;  %v83_v22 = vld [vmem:[%s1497_s1 + $0x20] sm:$0xff]  ;;  %v1058_v43 = vmov 32.0   ;;  %v147_v57 = vld [vmem:[%s1497_s1 + $0x38] sm:$0xff]  ;;  %vm175_vm10 = vcmask 392192   ;;  %s923_s24 = sshll.u32 %s1499_s3, 4  ;;  %s924_s24 = int_to_ptr.hbm [resolvable:$true] %s923_s24 }
   0xc   :  { %104 = vmatpush.msra.mxu1 %v84_v21  ;;  %v957_v32 = vld [vmem:[%s1498_s2 + $0x1] ss:$0 sm:$0xff]  ;;  %v958_v35 = vld [vmem:[%s1498_s2 + $0x2] ss:$0 sm:$0xff]  ;;  %v959_v39 = vld [vmem:[%s1498_s2 + $0x3] ss:$0 sm:$0xff] }
   0xd   :  { %v149_v55 = vld [vmem:[%s1497_s1 + $0x48] sm:$0xff]  ;;  %v148_v56 = vld [vmem:[%s1497_s1 + $0x40] sm:$0xff]  ;;  %v146_v58 = vld [vmem:[%s1497_s1 + $0x30] sm:$0xff] }
   0xe   :  { %105 = vmatpush.msra.mxu1 %v83_v22  ;;  %167 = vmatpush.msra.mxu2 %v149_v55  ;;  %v960_v4 = vld [vmem:[%s1498_s2 + $0x4] ss:$0 sm:$0xff] }
  0x10   :  { %168 = vmatpush.msra.mxu2 %v148_v56 }
  0x11   :  { %v1000_v10 = vpop.eup %999 }
  0x12   :  { %v51_v11 = vmul.f32 16.0, %v1000_v10  ;;  %vm55_vm2 = vweird.f32 %v1000_v10  ;;  %169 = vmatpush.msra.mxu2 %v147_v57 }
  0x14   :  { %v52_v12 = vsub.f32 1.0, %v51_v11  ;;  %170 = vmatpush.msra.mxu2 %v146_v58  ;;  %v962_v11 = vld [vmem:[%s1498_s2 + $0x6] ss:$0 sm:$0xff] }
  0x16   :  { %v53_v13 = vmul.f32 %v1000_v10, %v52_v12 }
  0x18   :  { %v54_v14 = vadd.f32 %v1000_v10, %v53_v13 }
  0x1a   :  { %v1102_v15 = vsel %vm55_vm2, %v1000_v10, %v54_v14 }
  0x86   :  { %v43_v6 = vpop.f32.mrf.mxu0 }
  0x87   :  { %v44_v7 = vadd.f32 %v956_v5, %v43_v6 }
  0x89   :  { %v47_v8 = vsel %vm46_vm1, %v44_v7, 0.0 }
  0x8a   :  { %48 = vadd.xlane.f32.xlu0 %v47_v8 }
  0xfd   :  { %v49_v16 = vpop.xlane.xlu0 %48 }
  0xfe   :  { %v57_v17 = vmul.f32 %v1102_v15, %v49_v16  ;;  %v1059_v16 = vmov 48.0  }
 0x100   :  { %v58_v18 = vsub.f32 %v44_v7, %v57_v17  ;;  %v961_v7 = vld [vmem:[%s1498_s2 + $0x5] ss:$0 sm:$0xff] }
 0x102   :  { %v59_v19 = vmul.f32 %v58_v18, %v58_v18 }
 0x104   :  { %v60_v20 = vsel %vm46_vm1, %v59_v19, 0.0 }
 0x105   :  { %61 = vadd.xlane.f32.xlu0 %v60_v20 }
 0x178   :  { %v62_v23 = vpop.xlane.xlu0 %61 }
 0x179   :  { %v63_v24 = vmul.f32 %v62_v23, %v1102_v15 }
 0x17b   :  { %v64_v25 = vadd.f32 1e-05, %v63_v24 }
 0x17d   :  { %1001 = vrsqrt.f32 %v64_v25  ;;  %vm71_vm4 = vweird.f32 %v64_v25 }
 0x17e   :  { %1003 = vrcp.f32 %v1058_v43 }
 0x183   :  { %v1002_v26 = vpop.eup %1001 }
 0x184   :  { %v66_v27 = vmul.f32 %v1002_v26, %v64_v25  ;;  %vm72_vm3 = vweird.f32 %v1002_v26  ;;  %v1004_v44 = vpop.eup %1003 }
 0x185   :  { %vm73_vm5 = vmor %vm71_vm4, %vm72_vm3  ;;  %v114_v45 = vmul.f32 32.0, %v1004_v44  ;;  %vm118_vm6 = vweird.f32 %v1004_v44 }
 0x186   :  { %v67_v28 = vmul.f32 %v1002_v26, %v66_v27 }
 0x187   :  { %v115_v46 = vsub.f32 1.0, %v114_v45  ;;  %v963_v45 = vld [vmem:[%s1498_s2 + $0x7] ss:$0 sm:$0xff] }
 0x188   :  { %v68_v29 = vmul.f32 0.5, %v67_v28  ;;  %v217_v28 = vld [vmem:[%s1497_s1 + $0x78] sm:$0xff] }
 0x189   :  { %v116_v47 = vmul.f32 %v1004_v44, %v115_v46  ;;  %233 = vmatpush.msra.mxu3 %v217_v28  ;;  %v330_v28 = vld [vmem:[%s1497_s1 + $0x98] sm:$0xff] }
 0x18a   :  { %v69_v30 = vsub.f32 1.5, %v68_v29  ;;  %v216_v29 = vld [vmem:[%s1497_s1 + $0x70] sm:$0xff] }
 0x18b   :  { %v117_v48 = vadd.f32 %v1004_v44, %v116_v47  ;;  %234 = vmatpush.msra.mxu3 %v216_v29  ;;  %v329_v29 = vld [vmem:[%s1497_s1 + $0x90] sm:$0xff] }
 0x18c   :  { %v70_v31 = vmul.f32 %v1002_v26, %v69_v30  ;;  %v215_v30 = vld [vmem:[%s1497_s1 + $0x68] sm:$0xff] }
 0x18d   :  { %v1129_v49 = vsel %vm118_vm6, %v1004_v44, %v117_v48  ;;  %235 = vmatpush.msra.mxu3 %v215_v30  ;;  %v964_v48 = vld [vmem:[%s1498_s2 + $0x8] ss:$0 sm:$0xff] }
 0x18e   :  { %v74_v33 = vsel %vm73_vm5, %v1002_v26, %v70_v31  ;;  %v214_v31 = vld [vmem:[%s1497_s1 + $0x60] sm:$0xff] }
 0x18f   :  { %v75_v34 = vmul.f32 %v74_v33, %v58_v18  ;;  %236 = vmatpush.msra.mxu3 %v214_v31  ;;  %v212_v33 = vld [vmem:[%s1497_s1 + $0x50] sm:$0xff] }
 0x191   :  { %v78_v36 = vmul.f32 %v957_v32, %v75_v34  ;;  %v213_v32 = vld [vmem:[%s1497_s1 + $0x58] sm:$0xff] }
 0x192   :  { %237 = vmatpush.msra.mxu3 %v213_v32 }
 0x193   :  { %v1119_v37 = vadd.f32 %v958_v35, %v78_v36 }
 0x194   :  { %238 = vmatpush.msra.mxu3 %v212_v33 }
 0x195   :  { %v82_v38 = vmax.f32 %v1119_v37, 0.0 }
 0x197   :  { %933 = vmatmul.msk.f32.vlgmr.msra.gmra.mxu1 %vm46_vm1, %v82_v38 }
 0x214   :  { %v107_v40 = vpop.f32.mrf.mxu1 }
 0x215   :  { %v108_v41 = vadd.f32 %v959_v39, %v107_v40 }
 0x217   :  { %v110_v42 = vsel %vm22_vm0, %v108_v41, 0.0 }
 0x218   :  { %111 = vadd.xlane.f32.xlu1 %v110_v42 }
 0x28b   :  { %v112_v50 = vpop.xlane.xlu1 %111 }
 0x28c   :  { %v120_v51 = vmul.f32 %v1129_v49, %v112_v50 }
 0x28e   :  { %v121_v52 = vsub.f32 %v108_v41, %v120_v51 }
 0x290   :  { %v122_v53 = vmul.f32 %v121_v52, %v121_v52 }
 0x292   :  { %v123_v54 = vsel %vm22_vm0, %v122_v53, 0.0  ;;  %v965_v53 = vld [vmem:[%s1498_s2 + $0x9] ss:$0 sm:$0xff] }
 0x293   :  { %124 = vadd.xlane.f32.xlu1 %v123_v54 }
 0x306   :  { %v125_v59 = vpop.xlane.xlu1 %124 }
 0x307   :  { %v126_v60 = vmul.f32 %v125_v59, %v1129_v49 }
 0x309   :  { %v127_v61 = vadd.f32 1e-05, %v126_v60 }
 0x30b   :  { %1005 = vrsqrt.f32 %v127_v61  ;;  %vm134_vm8 = vweird.f32 %v127_v61 }
 0x30c   :  { %1007 = vrcp.f32 %v1059_v16 }
 0x311   :  { %v1006_v62 = vpop.eup %1005 }
 0x312   :  { %v129_v63 = vmul.f32 %v1006_v62, %v127_v61  ;;  %vm135_vm7 = vweird.f32 %v1006_v62  ;;  %v1008_v17 = vpop.eup %1007 }
 0x313   :  { %vm136_vm9 = vmor %vm134_vm8, %vm135_vm7  ;;  %v180_v18 = vmul.f32 48.0, %v1008_v17  ;;  %vm184_vm11 = vweird.f32 %v1008_v17 }
 0x314   :  { %v130_v0 = vmul.f32 %v1006_v62, %v129_v63  ;;  %v273_v63 = vld [vmem:[%s1497_s1 + $0x80] sm:$0xff] }
 0x315   :  { %v181_v19 = vsub.f32 1.0, %v180_v18  ;;  %v968_v18 = vld [vmem:[%s1498_s2 + $0xc] ss:$0 sm:$0xff] }
 0x316   :  { %v131_v1 = vmul.f32 0.5, %v130_v0 }
 0x317   :  { %v182_v20 = vmul.f32 %v1008_v17, %v181_v19 }
 0x318   :  { %v132_v2 = vsub.f32 1.5, %v131_v1 }
 0x319   :  { %v183_v21 = vadd.f32 %v1008_v17, %v182_v20 }
 0x31a   :  { %v133_v3 = vmul.f32 %v1006_v62, %v132_v2 }
 0x31b   :  { %v1157_v22 = vsel %vm184_vm11, %v1008_v17, %v183_v21 }
 0x31c   :  { %v137_v5 = vsel %vm136_vm9, %v1006_v62, %v133_v3  ;;  %v274_v62 = vld [vmem:[%s1497_s1 + $0x88] sm:$0xff] }
 0x31d   :  { %v138_v6 = vmul.f32 %v137_v5, %v121_v52  ;;  %294 = vmatpush.msrb.mxu1 %v274_v62  ;;  %v388_v62 = vld [vmem:[%s1497_s1 + $0xb8] sm:$0xff] }
 0x31f   :  { %v141_v8 = vmul.f32 %v960_v4, %v138_v6  ;;  %295 = vmatpush.msrb.mxu1 %v273_v63  ;;  %v387_v63 = vld [vmem:[%s1497_s1 + $0xb0] sm:$0xff] }
 0x321   :  { %v144_v9 = vadd.f32 %v961_v7, %v141_v8 }
 0x323   :  { %v145_v10 = vmax.f32 %v144_v9, 0.0  ;;  %v966_v9 = vld [vmem:[%s1498_s2 + $0xa] ss:$0 sm:$0xff] }
 0x325   :  { %934 = vmatmul.msk.f32.vlgmr.msra.gmra.mxu2 %vm22_vm0, %v145_v10 }
 0x3a8   :  { %v172_v12 = vpop.f32.mrf.mxu2 }
 0x3a9   :  { %v173_v13 = vadd.f32 %v962_v11, %v172_v12  ;;  %v967_v12 = vld [vmem:[%s1498_s2 + $0xb] ss:$0 sm:$0xff] }
 0x3ab   :  { %v176_v14 = vsel %vm175_vm10, %v173_v13, 0.0 }
 0x3ac   :  { %177 = vadd.xlane.f32.xlu2 %v176_v14 }
 0x41f   :  { %v178_v23 = vpop.xlane.xlu2 %177 }
 0x420   :  { %v186_v24 = vmul.f32 %v1157_v22, %v178_v23 }
 0x422   :  { %v187_v25 = vsub.f32 %v173_v13, %v186_v24 }
 0x424   :  { %v188_v26 = vmul.f32 %v187_v25, %v187_v25 }
 0x426   :  { %v189_v27 = vsel %vm175_vm10, %v188_v26, 0.0  ;;  %v332_v26 = vld [vmem:[%s1497_s1 + $0xa8] sm:$0xff] }
 0x427   :  { %190 = vadd.xlane.f32.xlu2 %v189_v27  ;;  %v331_v27 = vld [vmem:[%s1497_s1 + $0xa0] sm:$0xff]  ;;  %350 = vmatpush.msrb.mxu0 %v332_v26 }
 0x429   :  { %351 = vmatpush.msrb.mxu0 %v331_v27  ;;  %v449_v27 = vld [vmem:[%s1497_s1 + $0xe8] sm:$0xff] }
 0x42a   :  { %469 = vmatpush.msra.mxu1 %v449_v27  ;;  %v563_v27 = vld [vmem:[%s1497_s1 + $0x118] sm:$0xff] }
 0x42b   :  { %352 = vmatpush.msrb.mxu0 %v330_v28  ;;  %v448_v28 = vld [vmem:[%s1497_s1 + $0xe0] sm:$0xff] }
 0x42c   :  { %470 = vmatpush.msra.mxu1 %v448_v28  ;;  %v562_v28 = vld [vmem:[%s1497_s1 + $0x110] sm:$0xff] }
 0x42d   :  { %353 = vmatpush.msrb.mxu0 %v329_v29 }
 0x49a   :  { %v191_v34 = vpop.xlane.xlu2 %190 }
 0x49b   :  { %v192_v35 = vmul.f32 %v191_v34, %v1157_v22 }
 0x49d   :  { %v193_v36 = vadd.f32 1e-05, %v192_v35 }
 0x49f   :  { %1009 = vrsqrt.f32 %v193_v36  ;;  %vm200_vm13 = vweird.f32 %v193_v36 }
 0x4a5   :  { %v1010_v39 = vpop.eup %1009 }
 0x4a6   :  { %v195_v40 = vmul.f32 %v1010_v39, %v193_v36  ;;  %vm201_vm12 = vweird.f32 %v1010_v39 }
 0x4a7   :  { %vm202_vm14 = vmor %vm200_vm13, %vm201_vm12 }
 0x4a8   :  { %v196_v41 = vmul.f32 %v1010_v39, %v195_v40 }
 0x4aa   :  { %v197_v42 = vmul.f32 0.5, %v196_v41  ;;  %v969_v41 = vld [vmem:[%s1498_s2 + $0xd] ss:$0 sm:$0xff] }
 0x4ac   :  { %v198_v43 = vsub.f32 1.5, %v197_v42 }
 0x4ae   :  { %v199_v44 = vmul.f32 %v1010_v39, %v198_v43 }
 0x4b0   :  { %v203_v46 = vsel %vm202_vm14, %v1010_v39, %v199_v44  ;;  %v970_v44 = vld [vmem:[%s1498_s2 + $0xe] ss:$0 sm:$0xff] }
 0x4b1   :  { %v204_v47 = vmul.f32 %v203_v46, %v187_v25 }
 0x4b3   :  { %v207_v50 = vmul.f32 %v963_v45, %v204_v47 }
 0x4b5   :  { %v210_v51 = vadd.f32 %v964_v48, %v207_v50  ;;  %v971_v48 = vld [vmem:[%s1498_s2 + $0xf] ss:$0 sm:$0xff] }
 0x4b7   :  { %v211_v52 = vmax.f32 %v210_v51, 0.0 }
 0x4b9   :  { %935 = vmatmul.msk.f32.vlgmr.msra.gmra.mxu3 %vm175_vm10, %v211_v52 }
 0x53c   :  { %v240_v54 = vpop.f32.mrf.mxu3 }
 0x53d   :  { %v241_v55 = vadd.f32 %v965_v53, %v240_v54 }
 0x53f   :  { %v243_v56 = vsel %vm46_vm1, %v241_v55, 0.0 }
 0x540   :  { %244 = vadd.xlane.f32.xlu0 %v243_v56 }
 0x5b3   :  { %v245_v57 = vpop.xlane.xlu0 %244 }
 0x5b4   :  { %v246_v58 = vmul.f32 %v245_v57, %v1102_v15 }
 0x5b6   :  { %v247_v59 = vsub.f32 %v241_v55, %v246_v58  ;;  %v392_v58 = vld [vmem:[%s1497_s1 + $0xd8] sm:$0xff] }
 0x5b7   :  { %408 = vmatpush.msrb.mxu2 %v392_v58  ;;  %v505_v58 = vld [vmem:[%s1497_s1 + $0xf8] sm:$0xff] }
 0x5b8   :  { %v248_v60 = vmul.f32 %v247_v59, %v247_v59 }
 0x5ba   :  { %v249_v61 = vsel %vm46_vm1, %v248_v60, 0.0  ;;  %v390_v60 = vld [vmem:[%s1497_s1 + $0xc8] sm:$0xff] }
 0x5bb   :  { %250 = vadd.xlane.f32.xlu1 %v249_v61  ;;  %v389_v61 = vld [vmem:[%s1497_s1 + $0xc0] sm:$0xff] }
 0x62e   :  { %v251_v0 = vpop.xlane.xlu1 %250 }
 0x62f   :  { %v252_v1 = vmul.f32 %v251_v0, %v1102_v15 }
 0x631   :  { %v253_v2 = vadd.f32 1e-05, %v252_v1 }
 0x633   :  { %1011 = vrsqrt.f32 %v253_v2  ;;  %vm260_vm2 = vweird.f32 %v253_v2 }
 0x639   :  { %v1012_v3 = vpop.eup %1011 }
 0x63a   :  { %v255_v4 = vmul.f32 %v1012_v3, %v253_v2  ;;  %vm261_vm15 = vweird.f32 %v1012_v3 }
 0x63b   :  { %vm262_vm3 = vmor %vm260_vm2, %vm261_vm15 }
 0x63c   :  { %v256_v5 = vmul.f32 %v1012_v3, %v255_v4 }
 0x63e   :  { %v257_v6 = vmul.f32 0.5, %v256_v5 }
 0x640   :  { %v258_v7 = vsub.f32 1.5, %v257_v6 }
 0x642   :  { %v259_v8 = vmul.f32 %v1012_v3, %v258_v7 }
 0x644   :  { %v263_v10 = vsel %vm262_vm3, %v1012_v3, %v259_v8 }
 0x645   :  { %v264_v11 = vmul.f32 %v263_v10, %v247_v59  ;;  %v391_v59 = vld [vmem:[%s1497_s1 + $0xd0] sm:$0xff] }
 0x646   :  { %409 = vmatpush.msrb.mxu2 %v391_v59  ;;  %v504_v59 = vld [vmem:[%s1497_s1 + $0xf0] sm:$0xff] }
 0x647   :  { %v267_v13 = vmul.f32 %v966_v9, %v264_v11  ;;  %v972_v9 = vld [vmem:[%s1498_s2 + $0x10] ss:$0 sm:$0xff] }
 0x648   :  { %410 = vmatpush.msrb.mxu2 %v390_v60 }
 0x649   :  { %v270_v14 = vadd.f32 %v967_v12, %v267_v13  ;;  %v973_v12 = vld [vmem:[%s1498_s2 + $0x11] ss:$0 sm:$0xff] }
 0x64a   :  { %411 = vmatpush.msrb.mxu2 %v389_v61 }
 0x64b   :  { %v1208_v16 = vadd.f32 %v270_v14, %v82_v38 }
 0x64c   :  { %412 = vmatpush.msrb.mxu2 %v388_v62 }
 0x64d   :  { %v272_v17 = vmax.f32 %v1208_v16, 0.0 }
 0x64e   :  { %413 = vmatpush.msrb.mxu2 %v387_v63 }
 0x64f   :  { %936 = vmatmul.msk.f32.vlgmr.msrb.gmra.mxu1 %vm46_vm1, %v272_v17 }
 0x6cc   :  { %v297_v19 = vpop.f32.mrf.mxu1 }
 0x6cd   :  { %v298_v20 = vadd.f32 %v968_v18, %v297_v19  ;;  %v974_v19 = vld [vmem:[%s1498_s2 + $0x12] ss:$0 sm:$0xff] }
 0x6cf   :  { %v300_v21 = vsel %vm22_vm0, %v298_v20, 0.0 }
 0x6d0   :  { %301 = vadd.xlane.f32.xlu2 %v300_v21 }
 0x743   :  { %v302_v23 = vpop.xlane.xlu2 %301 }
 0x744   :  { %v303_v37 = vmul.f32 %v302_v23, %v1129_v49 }
 0x746   :  { %v304_v38 = vsub.f32 %v298_v20, %v303_v37 }
 0x748   :  { %v305_v24 = vmul.f32 %v304_v38, %v304_v38 }
 0x74a   :  { %v306_v25 = vsel %vm22_vm0, %v305_v24, 0.0 }
 0x74b   :  { %307 = vadd.xlane.f32.xlu0 %v306_v25 }
 0x7be   :  { %v308_v30 = vpop.xlane.xlu0 %307 }
 0x7bf   :  { %v309_v31 = vmul.f32 %v308_v30, %v1129_v49 }
 0x7c1   :  { %v310_v32 = vadd.f32 1e-05, %v309_v31 }
 0x7c3   :  { %1013 = vrsqrt.f32 %v310_v32  ;;  %vm317_vm5 = vweird.f32 %v310_v32 }
 0x7c9   :  { %v1014_v33 = vpop.eup %1013 }
 0x7ca   :  { %v312_v34 = vmul.f32 %v1014_v33, %v310_v32  ;;  %vm318_vm4 = vweird.f32 %v1014_v33 }
 0x7cb   :  { %vm319_vm6 = vmor %vm317_vm5, %vm318_vm4 }
 0x7cc   :  { %v313_v35 = vmul.f32 %v1014_v33, %v312_v34 }
 0x7ce   :  { %v314_v36 = vmul.f32 0.5, %v313_v35 }
 0x7d0   :  { %v315_v39 = vsub.f32 1.5, %v314_v36 }
 0x7d2   :  { %v316_v40 = vmul.f32 %v1014_v33, %v315_v39 }
 0x7d4   :  { %v320_v42 = vsel %vm319_vm6, %v1014_v33, %v316_v40  ;;  %v975_v40 = vld [vmem:[%s1498_s2 + $0x13] ss:$0 sm:$0xff] }
 0x7d5   :  { %v321_v43 = vmul.f32 %v320_v42, %v304_v38  ;;  %v976_v42 = vld [vmem:[%s1498_s2 + $0x14] ss:$0 sm:$0xff] }
 0x7d7   :  { %v324_v45 = vmul.f32 %v969_v41, %v321_v43 }
 0x7d9   :  { %v327_v46 = vadd.f32 %v970_v44, %v324_v45 }
 0x7db   :  { %v328_v47 = vmax.f32 %v327_v46, 0.0 }
 0x7dd   :  { %937 = vmatmul.msk.f32.vlgmr.msrb.gmra.mxu0 %vm22_vm0, %v328_v47 }
 0x85a   :  { %v355_v50 = vpop.f32.mrf.mxu0 }
 0x85b   :  { %v356_v51 = vadd.f32 %v971_v48, %v355_v50  ;;  %v977_v48 = vld [vmem:[%s1498_s2 + $0x15] ss:$0 sm:$0xff] }
 0x85d   :  { %v358_v52 = vsel %vm175_vm10, %v356_v51, 0.0 }
 0x85e   :  { %359 = vadd.xlane.f32.xlu1 %v358_v52 }
 0x8d1   :  { %v360_v53 = vpop.xlane.xlu1 %359 }
 0x8d2   :  { %v361_v54 = vmul.f32 %v360_v53, %v1157_v22 }
 0x8d4   :  { %v362_v55 = vsub.f32 %v356_v51, %v361_v54 }
 0x8d6   :  { %v363_v56 = vmul.f32 %v362_v55, %v362_v55 }
 0x8d8   :  { %v364_v57 = vsel %vm175_vm10, %v363_v56, 0.0  ;;  %v507_v56 = vld [vmem:[%s1497_s1 + $0x108] sm:$0xff] }
 0x8d9   :  { %365 = vadd.xlane.f32.xlu2 %v364_v57  ;;  %v506_v57 = vld [vmem:[%s1497_s1 + $0x100] sm:$0xff]  ;;  %525 = vmatpush.msrb.mxu3 %v507_v56 }
 0x8db   :  { %526 = vmatpush.msrb.mxu3 %v506_v57  ;;  %v624_v57 = vld [vmem:[%s1497_s1 + $0x148] sm:$0xff] }
 0x8dc   :  { %644 = vmatpush.msrb.mxu1 %v624_v57  ;;  %v737_v57 = vld [vmem:[%s1497_s1 + $0x170] sm:$0xff] }
 0x8dd   :  { %527 = vmatpush.msrb.mxu3 %v505_v58  ;;  %v623_v58 = vld [vmem:[%s1497_s1 + $0x140] sm:$0xff] }
 0x8de   :  { %645 = vmatpush.msrb.mxu1 %v623_v58 }
 0x8df   :  { %528 = vmatpush.msrb.mxu3 %v504_v59 }
 0x94c   :  { %v366_v0 = vpop.xlane.xlu2 %365 }
 0x94d   :  { %v367_v1 = vmul.f32 %v366_v0, %v1157_v22 }
 0x94f   :  { %v368_v2 = vadd.f32 1e-05, %v367_v1 }
 0x951   :  { %1015 = vrsqrt.f32 %v368_v2  ;;  %vm375_vm8 = vweird.f32 %v368_v2 }
 0x957   :  { %v1016_v3 = vpop.eup %1015 }
 0x958   :  { %v370_v4 = vmul.f32 %v1016_v3, %v368_v2  ;;  %vm376_vm7 = vweird.f32 %v1016_v3 }
 0x959   :  { %vm377_vm9 = vmor %vm375_vm8, %vm376_vm7 }
 0x95a   :  { %v371_v5 = vmul.f32 %v1016_v3, %v370_v4 }
 0x95c   :  { %v372_v6 = vmul.f32 0.5, %v371_v5  ;;  %v978_v5 = vld [vmem:[%s1498_s2 + $0x16] ss:$0 sm:$0xff] }
 0x95e   :  { %v373_v7 = vsub.f32 1.5, %v372_v6 }
 0x960   :  { %v374_v8 = vmul.f32 %v1016_v3, %v373_v7 }
 0x962   :  { %v378_v10 = vsel %vm377_vm9, %v1016_v3, %v374_v8  ;;  %v979_v8 = vld [vmem:[%s1498_s2 + $0x17] ss:$0 sm:$0xff] }
 0x963   :  { %v379_v11 = vmul.f32 %v378_v10, %v362_v55 }
 0x965   :  { %v382_v13 = vmul.f32 %v972_v9, %v379_v11 }
 0x967   :  { %v385_v14 = vadd.f32 %v973_v12, %v382_v13  ;;  %v980_v12 = vld [vmem:[%s1498_s2 + $0x18] ss:$0 sm:$0xff] }
 0x969   :  { %v386_v18 = vmax.f32 %v385_v14, 0.0 }
 0x96b   :  { %938 = vmatmul.msk.f32.vlgmr.msrb.gmra.mxu2 %vm175_vm10, %v386_v18 }
 0x9ee   :  { %v415_v20 = vpop.f32.mrf.mxu2 }
 0x9ef   :  { %v416_v21 = vadd.f32 %v974_v19, %v415_v20 }
 0x9f1   :  { %v418_v23 = vsel %vm46_vm1, %v416_v21, 0.0 }
 0x9f2   :  { %419 = vadd.xlane.f32.xlu0 %v418_v23 }
 0xa65   :  { %v420_v37 = vpop.xlane.xlu0 %419 }
 0xa66   :  { %v421_v38 = vmul.f32 %v420_v37, %v1102_v15 }
 0xa68   :  { %v422_v24 = vsub.f32 %v416_v21, %v421_v38  ;;  %v567_v38 = vld [vmem:[%s1497_s1 + $0x138] sm:$0xff] }
 0xa69   :  { %583 = vmatpush.msra.mxu0 %v567_v38  ;;  %v680_v38 = vld [vmem:[%s1497_s1 + $0x158] sm:$0xff] }
 0xa6a   :  { %v423_v25 = vmul.f32 %v422_v24, %v422_v24 }
 0xa6c   :  { %v424_v26 = vsel %vm46_vm1, %v423_v25, 0.0  ;;  %v565_v25 = vld [vmem:[%s1497_s1 + $0x128] sm:$0xff] }
 0xa6d   :  { %425 = vadd.xlane.f32.xlu1 %v424_v26  ;;  %v564_v26 = vld [vmem:[%s1497_s1 + $0x120] sm:$0xff] }
 0xae0   :  { %v426_v29 = vpop.xlane.xlu1 %425 }
 0xae1   :  { %v427_v30 = vmul.f32 %v426_v29, %v1102_v15 }
 0xae3   :  { %v428_v31 = vadd.f32 1e-05, %v427_v30 }
 0xae5   :  { %1017 = vrsqrt.f32 %v428_v31  ;;  %vm435_vm12 = vweird.f32 %v428_v31 }
 0xaeb   :  { %v1018_v32 = vpop.eup %1017 }
 0xaec   :  { %v430_v33 = vmul.f32 %v1018_v32, %v428_v31  ;;  %vm436_vm11 = vweird.f32 %v1018_v32 }
 0xaed   :  { %vm437_vm13 = vmor %vm435_vm12, %vm436_vm11 }
 0xaee   :  { %v431_v34 = vmul.f32 %v1018_v32, %v430_v33 }
 0xaf0   :  { %v432_v35 = vmul.f32 0.5, %v431_v34 }
 0xaf2   :  { %v433_v36 = vsub.f32 1.5, %v432_v35 }
 0xaf4   :  { %v434_v39 = vmul.f32 %v1018_v32, %v433_v36 }
 0xaf6   :  { %v438_v41 = vsel %vm437_vm13, %v1018_v32, %v434_v39 }
 0xaf7   :  { %v439_v43 = vmul.f32 %v438_v41, %v422_v24  ;;  %v566_v24 = vld [vmem:[%s1497_s1 + $0x130] sm:$0xff] }
 0xaf8   :  { %584 = vmatpush.msra.mxu0 %v566_v24  ;;  %v679_v24 = vld [vmem:[%s1497_s1 + $0x150] sm:$0xff] }
 0xaf9   :  { %v442_v44 = vmul.f32 %v975_v40, %v439_v43  ;;  %v981_v40 = vld [vmem:[%s1498_s2 + $0x19] ss:$0 sm:$0xff]  ;;  %v982_v43 = vld [vmem:[%s1498_s2 + $0x1a] ss:$0 sm:$0xff] }
 0xafa   :  { %585 = vmatpush.msra.mxu0 %v565_v25 }
 0xafb   :  { %v445_v45 = vadd.f32 %v976_v42, %v442_v44 }
 0xafc   :  { %586 = vmatpush.msra.mxu0 %v564_v26 }
 0xafd   :  { %v1293_v46 = vadd.f32 %v445_v45, %v272_v17 }
 0xafe   :  { %587 = vmatpush.msra.mxu0 %v563_v27 }
 0xaff   :  { %v447_v47 = vmax.f32 %v1293_v46, 0.0 }
 0xb00   :  { %588 = vmatpush.msra.mxu0 %v562_v28 }
 0xb01   :  { %939 = vmatmul.msk.f32.vlgmr.msra.gmra.mxu1 %vm46_vm1, %v447_v47 }
 0xb7e   :  { %v472_v50 = vpop.f32.mrf.mxu1 }
 0xb7f   :  { %v473_v51 = vadd.f32 %v977_v48, %v472_v50  ;;  %v983_v50 = vld [vmem:[%s1498_s2 + $0x1b] ss:$0 sm:$0xff] }
 0xb81   :  { %v475_v52 = vsel %vm22_vm0, %v473_v51, 0.0 }
 0xb82   :  { %476 = vadd.xlane.f32.xlu2 %v475_v52 }
 0xbf5   :  { %v477_v53 = vpop.xlane.xlu2 %476 }
 0xbf6   :  { %v478_v16 = vmul.f32 %v477_v53, %v1129_v49 }
 0xbf8   :  { %v479_v17 = vsub.f32 %v473_v51, %v478_v16 }
 0xbfa   :  { %v480_v54 = vmul.f32 %v479_v17, %v479_v17 }
 0xbfc   :  { %v481_v55 = vsel %vm22_vm0, %v480_v54, 0.0 }
 0xbfd   :  { %482 = vadd.xlane.f32.xlu0 %v481_v55 }
 0xc70   :  { %v483_v60 = vpop.xlane.xlu0 %482 }
 0xc71   :  { %v484_v61 = vmul.f32 %v483_v60, %v1129_v49 }
 0xc73   :  { %v485_v62 = vadd.f32 1e-05, %v484_v61 }
 0xc75   :  { %1019 = vrsqrt.f32 %v485_v62  ;;  %vm492_vm15 = vweird.f32 %v485_v62 }
 0xc7b   :  { %v1020_v63 = vpop.eup %1019 }
 0xc7c   :  { %v487_v0 = vmul.f32 %v1020_v63, %v485_v62  ;;  %vm493_vm14 = vweird.f32 %v1020_v63 }
 0xc7d   :  { %vm494_vm2 = vmor %vm492_vm15, %vm493_vm14 }
 0xc7e   :  { %v488_v1 = vmul.f32 %v1020_v63, %v487_v0 }
 0xc80   :  { %v489_v2 = vmul.f32 0.5, %v488_v1 }
 0xc82   :  { %v490_v3 = vsub.f32 1.5, %v489_v2 }
 0xc84   :  { %v491_v4 = vmul.f32 %v1020_v63, %v490_v3 }
 0xc86   :  { %v495_v6 = vsel %vm494_vm2, %v1020_v63, %v491_v4  ;;  %v984_v4 = vld [vmem:[%s1498_s2 + $0x1c] ss:$0 sm:$0xff] }
 0xc87   :  { %v496_v7 = vmul.f32 %v495_v6, %v479_v17  ;;  %v985_v6 = vld [vmem:[%s1498_s2 + $0x1d] ss:$0 sm:$0xff] }
 0xc89   :  { %v499_v9 = vmul.f32 %v978_v5, %v496_v7 }
 0xc8b   :  { %v502_v10 = vadd.f32 %v979_v8, %v499_v9 }
 0xc8d   :  { %v503_v11 = vmax.f32 %v502_v10, 0.0 }
 0xc8f   :  { %940 = vmatmul.msk.f32.vlgmr.msrb.gmra.mxu3 %vm22_vm0, %v503_v11 }
 0xd12   :  { %v530_v13 = vpop.f32.mrf.mxu3 }
 0xd13   :  { %v531_v14 = vadd.f32 %v980_v12, %v530_v13  ;;  %v986_v12 = vld [vmem:[%s1498_s2 + $0x1e] ss:$0 sm:$0xff] }
 0xd15   :  { %v533_v18 = vsel %vm175_vm10, %v531_v14, 0.0 }
 0xd16   :  { %534 = vadd.xlane.f32.xlu1 %v533_v18 }
 0xd89   :  { %v535_v19 = vpop.xlane.xlu1 %534 }
 0xd8a   :  { %v536_v20 = vmul.f32 %v535_v19, %v1157_v22 }
 0xd8c   :  { %v537_v21 = vsub.f32 %v531_v14, %v536_v20 }
 0xd8e   :  { %v538_v23 = vmul.f32 %v537_v21, %v537_v21 }
 0xd90   :  { %v539_v37 = vsel %vm175_vm10, %v538_v23, 0.0  ;;  %v682_v23 = vld [vmem:[%s1497_s1 + $0x168] sm:$0xff] }
 0xd91   :  { %540 = vadd.xlane.f32.xlu2 %v539_v37  ;;  %700 = vmatpush.msra.mxu2 %v682_v23  ;;  %v681_v37 = vld [vmem:[%s1497_s1 + $0x160] sm:$0xff] }
 0xd92   :  { %v798_v23 = vld [vmem:[%s1497_s1 + $0x1a0] sm:$0xff] }
 0xd93   :  { %701 = vmatpush.msra.mxu2 %v681_v37 }
 0xd95   :  { %702 = vmatpush.msra.mxu2 %v680_v38 }
 0xd97   :  { %703 = vmatpush.msra.mxu2 %v679_v24  ;;  %v826_v24 = vld [vmem:[%s1497_s1 + $0x1b0] sm:$0xff] }
 0xd98   :  { %848 = vmatpush.msra.mxu1 %v826_v24 }
 0xe04   :  { %v541_v29 = vpop.xlane.xlu2 %540 }
 0xe05   :  { %v542_v30 = vmul.f32 %v541_v29, %v1157_v22 }
 0xe07   :  { %v543_v31 = vadd.f32 1e-05, %v542_v30 }
 0xe09   :  { %1021 = vrsqrt.f32 %v543_v31  ;;  %vm550_vm4 = vweird.f32 %v543_v31 }
 0xe0f   :  { %v1022_v32 = vpop.eup %1021 }
 0xe10   :  { %v545_v33 = vmul.f32 %v1022_v32, %v543_v31  ;;  %vm551_vm3 = vweird.f32 %v1022_v32 }
 0xe11   :  { %vm552_vm5 = vmor %vm550_vm4, %vm551_vm3  ;;  %vm829_vm3 = vcmask 64512  }
 0xe12   :  { %v546_v34 = vmul.f32 %v1022_v32, %v545_v33 }
 0xe14   :  { %v547_v35 = vmul.f32 0.5, %v546_v34  ;;  %v987_v34 = vld [vmem:[%s1498_s2 + $0x1f] ss:$0 sm:$0xff] }
 0xe16   :  { %v548_v36 = vsub.f32 1.5, %v547_v35 }
 0xe18   :  { %v549_v39 = vmul.f32 %v1022_v32, %v548_v36 }
 0xe1a   :  { %v553_v41 = vsel %vm552_vm5, %v1022_v32, %v549_v39 }
 0xe1b   :  { %v554_v42 = vmul.f32 %v553_v41, %v537_v21 }
 0xe1d   :  { %v557_v44 = vmul.f32 %v981_v40, %v554_v42  ;;  %v989_v42 = vld [vmem:[%s1498_s2 + $0x21] ss:$0 sm:$0xff] }
 0xe1f   :  { %v560_v45 = vadd.f32 %v982_v43, %v557_v44 }
 0xe21   :  { %v561_v48 = vmax.f32 %v560_v45, 0.0 }
 0xe23   :  { %941 = vmatmul.msk.f32.vlgmr.msra.gmra.mxu0 %vm175_vm10, %v561_v48 }
 0xea0   :  { %v590_v51 = vpop.f32.mrf.mxu0 }
 0xea1   :  { %v591_v52 = vadd.f32 %v983_v50, %v590_v51 }
 0xea3   :  { %v593_v53 = vsel %vm46_vm1, %v591_v52, 0.0 }
 0xea4   :  { %594 = vadd.xlane.f32.xlu0 %v593_v53 }
 0xf17   :  { %v595_v16 = vpop.xlane.xlu0 %594 }
 0xf18   :  { %v596_v17 = vmul.f32 %v595_v16, %v1102_v15  ;;  %v742_v16 = vld [vmem:[%s1497_s1 + $0x198] sm:$0xff] }
 0xf19   :  { %758 = vmatpush.msra.mxu3 %v742_v16  ;;  %v997_v16 = vld [vmem:[%s1498_s2 + $0x29] ss:$0 sm:$0xff] }
 0xf1a   :  { %v597_v54 = vsub.f32 %v591_v52, %v596_v17  ;;  %v741_v17 = vld [vmem:[%s1497_s1 + $0x190] sm:$0xff] }
 0xf1b   :  { %759 = vmatpush.msra.mxu3 %v741_v17 }
 0xf1c   :  { %v598_v55 = vmul.f32 %v597_v54, %v597_v54 }
 0xf1e   :  { %v599_v56 = vsel %vm46_vm1, %v598_v55, 0.0  ;;  %v739_v55 = vld [vmem:[%s1497_s1 + $0x180] sm:$0xff] }
 0xf1f   :  { %600 = vadd.xlane.f32.xlu1 %v599_v56  ;;  %v738_v56 = vld [vmem:[%s1497_s1 + $0x178] sm:$0xff] }
 0xf92   :  { %v601_v59 = vpop.xlane.xlu1 %600 }
 0xf93   :  { %v602_v60 = vmul.f32 %v601_v59, %v1102_v15 }
 0xf95   :  { %v603_v61 = vadd.f32 1e-05, %v602_v60 }
 0xf97   :  { %1023 = vrsqrt.f32 %v603_v61  ;;  %vm610_vm7 = vweird.f32 %v603_v61 }
 0xf9d   :  { %v1024_v62 = vpop.eup %1023 }
 0xf9e   :  { %v605_v63 = vmul.f32 %v1024_v62, %v603_v61  ;;  %vm611_vm6 = vweird.f32 %v1024_v62 }
 0xf9f   :  { %vm612_vm8 = vmor %vm610_vm7, %vm611_vm6 }
 0xfa0   :  { %v606_v0 = vmul.f32 %v1024_v62, %v605_v63 }
 0xfa2   :  { %v607_v1 = vmul.f32 0.5, %v606_v0 }
 0xfa4   :  { %v608_v2 = vsub.f32 1.5, %v607_v1 }
 0xfa6   :  { %v609_v3 = vmul.f32 %v1024_v62, %v608_v2 }
 0xfa8   :  { %v613_v5 = vsel %vm612_vm8, %v1024_v62, %v609_v3  ;;  %v990_v3 = vld [vmem:[%s1498_s2 + $0x22] ss:$0 sm:$0xff] }
 0xfa9   :  { %v614_v7 = vmul.f32 %v613_v5, %v597_v54  ;;  %v740_v54 = vld [vmem:[%s1497_s1 + $0x188] sm:$0xff] }
 0xfaa   :  { %760 = vmatpush.msra.mxu3 %v740_v54 }
 0xfab   :  { %v617_v8 = vmul.f32 %v984_v4, %v614_v7 }
 0xfac   :  { %761 = vmatpush.msra.mxu3 %v739_v55 }
 0xfad   :  { %v620_v9 = vadd.f32 %v985_v6, %v617_v8 }
 0xfae   :  { %762 = vmatpush.msra.mxu3 %v738_v56  ;;  %v1060_v56 = vmov 0  }
 0xfaf   :  { %v1378_v10 = vadd.f32 %v620_v9, %v447_v47  ;;  %v992_v9 = vld [vmem:[%s1498_s2 + $0x24] ss:$0 sm:$0xff]  ;;  %954 = vset.pattern.permute.xlu2 %v1060_v56  ;;  %955 = vset.pattern.permute.xlu0 %v1060_v56 }
 0xfb0   :  { %763 = vmatpush.msra.mxu3 %v737_v57  ;;  %v998_v57 = vld [vmem:[%s1498_s2 + $0x2a] ss:$0 sm:$0xff] }
 0xfb1   :  { %v622_v11 = vmax.f32 %v1378_v10, 0.0  ;;  %v855_v10 = vld [vmem:[%s1497_s1 + $0x1b8] sm:$0xff] }
 0xfb3   :  { %942 = vmatmul.msk.f32.vlgmr.msrb.gmra.mxu1 %vm46_vm1, %v622_v11 }
0x1030   :  { %v647_v13 = vpop.f32.mrf.mxu1 }
0x1031   :  { %v648_v14 = vadd.f32 %v986_v12, %v647_v13 }
0x1033   :  { %v650_v18 = vsel %vm22_vm0, %v648_v14, 0.0 }
0x1034   :  { %651 = vadd.xlane.f32.xlu2 %v650_v18 }
0x10a7   :  { %v652_v19 = vpop.xlane.xlu2 %651 }
0x10a8   :  { %v653_v46 = vmul.f32 %v652_v19, %v1129_v49 }
0x10aa   :  { %v654_v47 = vsub.f32 %v648_v14, %v653_v46 }
0x10ac   :  { %v655_v20 = vmul.f32 %v654_v47, %v654_v47 }
0x10ae   :  { %v656_v21 = vsel %vm22_vm0, %v655_v20, 0.0 }
0x10af   :  { %657 = vadd.xlane.f32.xlu0 %v656_v21  ;;  %v799_v21 = vld [vmem:[%s1497_s1 + $0x1a8] sm:$0xff] }
0x10b0   :  { %819 = vmatpush.msrb.mxu0 %v799_v21 }
0x10b2   :  { %820 = vmatpush.msrb.mxu0 %v798_v23 }
0x1122   :  { %v658_v25 = vpop.xlane.xlu0 %657 }
0x1123   :  { %v659_v26 = vmul.f32 %v658_v25, %v1129_v49  ;;  %v988_v49 = vld [vmem:[%s1498_s2 + $0x20] ss:$0 sm:$0xff] }
0x1125   :  { %v660_v27 = vadd.f32 1e-05, %v659_v26 }
0x1127   :  { %1025 = vrsqrt.f32 %v660_v27  ;;  %vm667_vm11 = vweird.f32 %v660_v27 }
0x112d   :  { %v1026_v28 = vpop.eup %1025 }
0x112e   :  { %v662_v29 = vmul.f32 %v1026_v28, %v660_v27  ;;  %vm668_vm9 = vweird.f32 %v1026_v28 }
0x112f   :  { %vm669_vm12 = vmor %vm667_vm11, %vm668_vm9 }
0x1130   :  { %v663_v30 = vmul.f32 %v1026_v28, %v662_v29 }
0x1132   :  { %v664_v31 = vmul.f32 0.5, %v663_v30 }
0x1134   :  { %v665_v32 = vsub.f32 1.5, %v664_v31 }
0x1136   :  { %v666_v33 = vmul.f32 %v1026_v28, %v665_v32  ;;  %v993_v32 = vld [vmem:[%s1498_s2 + $0x25] ss:$0 sm:$0xff] }
0x1138   :  { %v670_v35 = vsel %vm669_vm12, %v1026_v28, %v666_v33  ;;  %v994_v33 = vld [vmem:[%s1498_s2 + $0x26] ss:$0 sm:$0xff] }
0x1139   :  { %v671_v36 = vmul.f32 %v670_v35, %v654_v47 }
0x113b   :  { %v674_v39 = vmul.f32 %v987_v34, %v671_v36 }
0x113d   :  { %v677_v40 = vadd.f32 %v988_v49, %v674_v39 }
0x113f   :  { %v678_v41 = vmax.f32 %v677_v40, 0.0  ;;  %v856_v40 = vld [vmem:[%s1497_s1 + $0x1c0] sm:$0xff] }
0x1140   :  { %876 = vmatpush.msrb.mxu2 %v856_v40 }
0x1141   :  { %943 = vmatmul.msk.f32.vlgmr.msra.gmra.mxu2 %vm22_vm0, %v678_v41  ;;  %v995_v41 = vld [vmem:[%s1498_s2 + $0x27] ss:$0 sm:$0xff] }
0x1142   :  { %877 = vmatpush.msrb.mxu2 %v855_v10 }
0x11c4   :  { %v705_v43 = vpop.f32.mrf.mxu2 }
0x11c5   :  { %v706_v44 = vadd.f32 %v989_v42, %v705_v43 }
0x11c7   :  { %v708_v45 = vsel %vm175_vm10, %v706_v44, 0.0 }
0x11c8   :  { %709 = vadd.xlane.f32.xlu1 %v708_v45  ;;  %v996_v45 = vld [vmem:[%s1498_s2 + $0x28] ss:$0 sm:$0xff] }
0x123b   :  { %v710_v48 = vpop.xlane.xlu1 %709 }
0x123c   :  { %v711_v50 = vmul.f32 %v710_v48, %v1157_v22 }
0x123e   :  { %v712_v51 = vsub.f32 %v706_v44, %v711_v50 }
0x1240   :  { %v713_v52 = vmul.f32 %v712_v51, %v712_v51 }
0x1242   :  { %v714_v53 = vsel %vm175_vm10, %v713_v52, 0.0 }
0x1243   :  { %715 = vadd.xlane.f32.xlu2 %v714_v53  ;;  %v883_v53 = vld [vmem:[%s1497_s1 + $0x1c8] sm:$0xff] }
0x12b6   :  { %v716_v58 = vpop.xlane.xlu2 %715 }
0x12b7   :  { %v717_v59 = vmul.f32 %v716_v58, %v1157_v22  ;;  %v991_v22 = vld [vmem:[%s1498_s2 + $0x23] ss:$0 sm:$0xff] }
0x12b9   :  { %v718_v60 = vadd.f32 1e-05, %v717_v59 }
0x12bb   :  { %1027 = vrsqrt.f32 %v718_v60  ;;  %vm725_vm13 = vweird.f32 %v718_v60 }
0x12c1   :  { %v1028_v61 = vpop.eup %1027 }
0x12c2   :  { %v720_v62 = vmul.f32 %v1028_v61, %v718_v60  ;;  %vm726_vm0 = vweird.f32 %v1028_v61 }
0x12c3   :  { %vm727_vm14 = vmor %vm725_vm13, %vm726_vm0 }
0x12c4   :  { %v721_v63 = vmul.f32 %v1028_v61, %v720_v62 }
0x12c6   :  { %v722_v0 = vmul.f32 0.5, %v721_v63 }
0x12c8   :  { %v723_v1 = vsub.f32 1.5, %v722_v0 }
0x12ca   :  { %v724_v2 = vmul.f32 %v1028_v61, %v723_v1 }
0x12cc   :  { %v728_v4 = vsel %vm727_vm14, %v1028_v61, %v724_v2 }
0x12cd   :  { %v729_v5 = vmul.f32 %v728_v4, %v712_v51 }
0x12cf   :  { %v732_v6 = vmul.f32 %v990_v3, %v729_v5 }
0x12d1   :  { %v735_v7 = vadd.f32 %v991_v22, %v732_v6 }
0x12d3   :  { %v736_v8 = vmax.f32 %v735_v7, 0.0 }
0x12d5   :  { %944 = vmatmul.msk.f32.vlgmr.msra.gmra.mxu3 %vm175_vm10, %v736_v8 }
0x1358   :  { %v765_v12 = vpop.f32.mrf.mxu3 }
0x1359   :  { %v766_v13 = vadd.f32 %v992_v9, %v765_v12 }
0x135b   :  { %v768_v14 = vsel %vm46_vm1, %v766_v13, 0.0 }
0x135c   :  { %769 = vadd.xlane.f32.xlu0 %v768_v14 }
0x13cf   :  { %v770_v18 = vpop.xlane.xlu0 %769 }
0x13d0   :  { %v771_v19 = vmul.f32 %v770_v18, %v1102_v15 }
0x13d2   :  { %v772_v46 = vsub.f32 %v766_v13, %v771_v19 }
0x13d4   :  { %v773_v47 = vmul.f32 %v772_v46, %v772_v46 }
0x13d6   :  { %v774_v20 = vsel %vm46_vm1, %v773_v47, 0.0 }
0x13d7   :  { %775 = vadd.xlane.f32.xlu1 %v774_v20 }
0x144a   :  { %v776_v37 = vpop.xlane.xlu1 %775 }
0x144b   :  { %v777_v38 = vmul.f32 %v776_v37, %v1102_v15 }
0x144d   :  { %v778_v25 = vadd.f32 1e-05, %v777_v38 }
0x144f   :  { %1029 = vrsqrt.f32 %v778_v25  ;;  %vm785_vm15 = vweird.f32 %v778_v25 }
0x1455   :  { %v1030_v26 = vpop.eup %1029 }
0x1456   :  { %v780_v27 = vmul.f32 %v1030_v26, %v778_v25  ;;  %vm786_vm10 = vweird.f32 %v1030_v26 }
0x1457   :  { %vm787_vm2 = vmor %vm785_vm15, %vm786_vm10 }
0x1458   :  { %v781_v28 = vmul.f32 %v1030_v26, %v780_v27 }
0x145a   :  { %v782_v29 = vmul.f32 0.5, %v781_v28 }
0x145c   :  { %v783_v30 = vsub.f32 1.5, %v782_v29 }
0x145e   :  { %v784_v31 = vmul.f32 %v1030_v26, %v783_v30 }
0x1460   :  { %v788_v15 = vsel %vm787_vm2, %v1030_v26, %v784_v31 }
0x1461   :  { %v789_v34 = vmul.f32 %v788_v15, %v772_v46 }
0x1463   :  { %v792_v35 = vmul.f32 %v993_v32, %v789_v34 }
0x1465   :  { %v795_v36 = vadd.f32 %v994_v33, %v792_v35 }
0x1467   :  { %v796_v49 = vadd.f32 %v795_v36, %v622_v11  ;;  %v884_v11 = vld [vmem:[%s1497_s1 + $0x1d0] sm:$0xff]  ;;  %s1061_s1 = smov [#allocation2]  }
0x1468   :  { %904 = vmatpush.msrb.mxu3 %v884_v11  ;;  %s921_s22 = sshll.u32 %s1061_s1, 4  ;;  %s922_s22 = int_to_ptr.vmem [resolvable:$true] %s921_s22 }
0x1469   :  { %v797_v39 = vmax.f32 %v796_v49, 0.0 }
0x146a   :  { %905 = vmatpush.msrb.mxu3 %v883_v53 }
0x146b   :  { %945 = vmatmul.msk.f32.vlgmr.msrb.gmra.mxu0 %vm46_vm1, %v797_v39 }
0x14e8   :  { %v822_v42 = vpop.f32.mrf.mxu0 }
0x14e9   :  { %v823_v43 = vadd.f32 %v995_v41, %v822_v42 }
0x14eb   :  { %v825_v44 = vmax.f32 %v823_v43, 0.0 }
0x14ed   :  { %946 = vmatmul.msk.f32.vlgmr.msra.gmra.mxu1 %vm829_vm3, %v825_v44 }
0x156a   :  { %v850_v48 = vpop.f32.mrf.mxu1 }
0x156b   :  { %v851_v50 = vadd.f32 %v996_v45, %v850_v48 }
0x156d   :  { %v853_v51 = vadd.f32 %v851_v50, %v797_v39 }
0x156f   :  { %v854_v52 = vmax.f32 %v853_v51, 0.0 }
0x1571   :  { %947 = vmatmul.msk.f32.vlgmr.msrb.gmra.mxu2 %vm46_vm1, %v854_v52 }
0x15f4   :  { %v879_v17 = vpop.f32.mrf.mxu2 }
0x15f5   :  { %v880_v54 = vadd.f32 %v997_v16, %v879_v17 }
0x15f7   :  { %v882_v55 = vmax.f32 %v880_v54, 0.0 }
0x15f9   :  { %948 = vmatmul.msk.f32.vlgmr.msrb.gmra.mxu3 %vm46_vm1, %v882_v55 }
0x167c   :  { %v907_v58 = vpop.f32.mrf.mxu3 }
0x167d   :  { %v908_v59 = vadd.f32 %v998_v57, %v907_v58 }
0x167f   :  { %912 = vperm.xlu2 %954, %v908_v59  }
0x16d9   :  { %v913_v60 = vpop.permute.xlu2 %912 }
0x16da   :  { %915 = vst [vmem:[#allocation2] sm:$0xff] %v913_v60 }
0x16db   :  { %926 = dma.vmem_to_hbm [thread:$0]  %s922_s22, 128, %s924_s24, [#allocation3]  }
0x16dc   :  { %1055 = dma.done.wait [#allocation3], 128  }
0x16dd   :  { %1056 = vsyncadd [#allocation3], 4294967168 }
0x16de   :  { %931 = vsyncpa [#allocation3], 1 }

</bundles_post_ra>
